<compile_context>
chip_gen: v6e
topology: v6e:2x2x1
jax: 0.10.0
libtpu: 0.0.40
codegen_flags: <defaults>
</compile_context>

<pallas_src>
import functools

import numpy as np
import jax
import jax.numpy as jnp
from jax.experimental import pallas as pl
from jax.experimental.pallas import tpu as pltpu

ACT_DTYPE = jnp.bfloat16                 # inter-kernel activation / mask storage dtype
_VMEM_LIMIT_BYTES = 48 * 1024 * 1024     # explicit scoped-VMEM cap, safe on v5e/v6e/v7x


def _round_up(x, m):
    return ((x + m - 1) // m) * m


def _leaky(v, slope):
    return jnp.where(v >= 0, v, v * slope)


# ---------------------------------------------------------------------------
# Small 0/1 helper matrices (precomputed host-side, exact in bf16).
# ---------------------------------------------------------------------------
@functools.lru_cache(maxsize=None)
def _mask_expand_mat(W, cout):
    """(W, W*cout) matrix E with E[w, w*cout:(w+1)*cout] = 1 (mask lane expansion)."""
    e = np.zeros((W, W * cout), np.float32)
    for w in range(W):
        e[w, w * cout:(w + 1) * cout] = 1.0
    return jnp.asarray(e, jnp.bfloat16)


@functools.lru_cache(maxsize=None)
def _pool_select_mats(W, C):
    """(2, W*C, (W/2)*C) lane-compaction matrices selecting even / odd W positions."""
    Wo = W // 2
    s = np.zeros((2, W * C, Wo * C), np.float32)
    for wo in range(Wo):
        for c in range(C):
            s[0, (2 * wo) * C + c, wo * C + c] = 1.0
            s[1, (2 * wo + 1) * C + c, wo * C + c] = 1.0
    return jnp.asarray(s, jnp.bfloat16)


# ---------------------------------------------------------------------------
# Block-banded weights: (KD,KH,KW,Cin,Cout) -> (KD,KH,W*Cin,W*Cout) bf16, realizing
# the 'same'-padded W-axis convolution as one matmul per (kd, kh) tap.
# Precomputed ONCE per layer at build time.
# ---------------------------------------------------------------------------
def _band_weights(w, W):
    KD, KH, KW, Cin, Cout = w.shape
    pw = (KW - 1) // 2
    sel = np.zeros((KW, W, W), np.float32)
    for kw in range(KW):
        for wo in range(W):
            wi = wo + kw - pw
            if 0 <= wi < W:
                sel[kw, wi, wo] = 1.0
    B = jnp.einsum('abkio,kvw->abviwo', w.astype(jnp.float32), jnp.asarray(sel))
    return B.reshape(KD, KH, W * Cin, W * Cout).astype(jnp.bfloat16)


# ---------------------------------------------------------------------------
# Fused conv kernel:
#   [LeakyReLU(in)] -> 3D conv ('same' H/W, optional depth stride)
#   -> [* active-mask] -> [+ residual] -> [LeakyReLU(out)]
#
# The input is staged into a single flat zero-padded scratch xpad of Lp rows,
# where each padded depth slice occupies L_pad (multiple of 8) rows and the
# interior sits at local row offset ph.  For tap (kd, kh) the LHS of the matmul
# is the contiguous slice xpad[kd*L_pad + kh : ... + L_acc], so the whole depth
# extent is contracted with a single MXU matmul per tap into an f32 accumulator
# laid out at the same padded row pitch (junk rows are simply never read back).
# ---------------------------------------------------------------------------
def _conv_kernel(*refs, D, Do, H, W, cout, KD, KH, pd, ph, L_pad, Lp, L_acc, sd,
                 slope, act_in, act_out, use_mask, use_res):
    it = iter(refs)
    x_ref = next(it)                               # (1, D, H, W*Cin)        bf16
    b_ref = next(it)                               # (KD, KH, W*Cin, W*Cout) bf16
    emat_ref = next(it) if use_mask else None      # (W, W*Cout)             bf16
    mask_ref = next(it) if use_mask else None      # (1, Do, H, W)           bf16
    res_ref = next(it) if use_res else None        # (1, Do, H, W*Cout)      bf16
    o_ref = next(it)                               # (1, Do, H, W*Cout)      bf16
    xpad_ref = next(it)                            # (Lp, W*Cin)   bf16 scratch
    acc_ref = next(it)                             # (L_acc, W*Cout) f32 scratch

    WCi = x_ref.shape[3]
    f32 = jnp.float32
    pdt = xpad_ref.dtype

    # ---- 1. zero only the halo rows of xpad, write the (activated) interior once.
    head = pd * L_pad + ph
    if head > 0:
        xpad_ref[pl.ds(0, head), :] = jnp.zeros((head, WCi), pdt)
    gap = L_pad - H
    if gap > 0 and D > 1:
        zgap = jnp.zeros((gap, WCi), pdt)
        for dz in range(D - 1):
            xpad_ref[pl.ds((pd + dz) * L_pad + ph + H, gap), :] = zgap
    t0 = (pd + D - 1) * L_pad + ph + H
    if Lp - t0 > 0:
        xpad_ref[pl.ds(t0, Lp - t0), :] = jnp.zeros((Lp - t0, WCi), pdt)
    for dz in range(D):
        xv = x_ref[0, dz]                                     # (H, W*Cin) bf16
        if act_in:
            xv = _leaky(xv, slope)                            # LeakyReLU(0) == 0
        xpad_ref[pl.ds((pd + dz) * L_pad + ph, H), :] = xv

    # ---- 2. banded contraction: one (L_acc, W*Cin) x (W*Cin, W*Cout) bf16 matmul
    #         per (kd, kh) tap, accumulated in the f32 VMEM scratch.
    first = True
    for kd in range(KD):
        for kh in range(KH):
            off = kd * L_pad + kh
            lhs = xpad_ref[pl.ds(off, L_acc), :]              # bf16, one slice per tap
            t = jnp.dot(lhs, b_ref[kd, kh], preferred_element_type=f32)
            if first:
                acc_ref[...] = t
                first = False
            else:
                acc_ref[...] += t

    # ---- 3. epilogue: mask / residual / activation per output depth slice.
    for d in range(Do):
        v = acc_ref[pl.ds(d * sd * L_pad, H), :]              # (H, W*Cout) f32, aligned
        if use_mask:
            # Expand the compact (H, W) mask to W*Cout lanes with a tiny 0/1 matmul.
            m = jnp.dot(mask_ref[0, d], emat_ref[...], preferred_element_type=f32)
            v = v * m
        if use_res:
            v = v + res_ref[0, d].astype(f32)
        if act_out:
            v = _leaky(v, slope)
        o_ref[0, d] = v.astype(o_ref.dtype)


def conv3d_fused(x, band, *, W, mask=None, res=None, stride_d=1, slope=0.0,
                 act_in=False, act_out=False):
    """Fused [act] -> conv3d ('same' H/W, depth stride) -> [*mask] -> [+res] -> [act].

    x:    (N, D, H, W*Cin)  bf16 activations (W and channels flattened, lane-dense)
    band: (KD, KH, W*Cin, W*Cout) bf16 block-banded weights (precomputed)
    mask: (N, D, H, W) compact 0/1 active mask (or None; stride_d must be 1)
    res:  (N, Do, H, W*Cout) residual to add (or None)
    """
    N, D, H, WCi = x.shape
    KD, KH, WCi2, WCo = band.shape
    assert WCi == WCi2 and KD % 2 == 1 and KH % 2 == 1
    cout = WCo // W
    pd, ph = (KD - 1) // 2, (KH - 1) // 2
    Do = (D + 2 * pd - KD) // stride_d + 1
    L_pad = _round_up(H + 2 * ph, 8)          # sublane-aligned per-depth row pitch
    Lp = (D + 2 * pd) * L_pad
    L_acc = (D - 1) * L_pad + H               # stride-1 depth rows; strided writeback

    use_mask = mask is not None
    use_res = res is not None
    if use_mask:
        assert stride_d == 1 and mask.shape == (N, D, H, W)
    if use_res:
        assert res.shape == (N, Do, H, WCo)

    kernel = functools.partial(
        _conv_kernel, D=D, Do=Do, H=H, W=W, cout=cout, KD=KD, KH=KH,
        pd=pd, ph=ph, L_pad=L_pad, Lp=Lp, L_acc=L_acc, sd=stride_d, slope=slope,
        act_in=act_in, act_out=act_out, use_mask=use_mask, use_res=use_res)

    idx4 = lambda n: (n, 0, 0, 0)
    in_specs = [pl.BlockSpec((1, D, H, WCi), idx4),
                pl.BlockSpec((KD, KH, WCi, WCo), lambda n: (0, 0, 0, 0))]
    operands = [x, band]
    if use_mask:
        in_specs.append(pl.BlockSpec((W, WCo), lambda n: (0, 0)))
        operands.append(_mask_expand_mat(W, cout))
        in_specs.append(pl.BlockSpec((1, D, H, W), idx4))
        operands.append(mask)
    if use_res:
        in_specs.append(pl.BlockSpec((1, Do, H, WCo), idx4))
        operands.append(res)

    out = pl.pallas_call(
        kernel,
        out_shape=jax.ShapeDtypeStruct((N, Do, H, WCo), x.dtype),
        grid=(N,),
        in_specs=in_specs,
        out_specs=pl.BlockSpec((1, Do, H, WCo), idx4),
        scratch_shapes=[pltpu.VMEM((Lp, WCi), jnp.bfloat16),
                        pltpu.VMEM((L_acc, WCo), jnp.float32)],
        compiler_params=pltpu.CompilerParams(
            dimension_semantics=("parallel",),
            vmem_limit_bytes=_VMEM_LIMIT_BYTES),
    )(*operands)
    return out                                    # (N, Do, H, W*Cout)


# ---------------------------------------------------------------------------
# Fused (BatchNorm==identity +) LeakyReLU + 2x2x2 max-pool kernel (stride 2),
# lane-dense in and out.
# ---------------------------------------------------------------------------
def _act_pool_kernel(x_ref, sel_ref, o_ref, *, Do, slope, apply_act):
    # x_ref:   (1, 2*Do, Ho, 2*W*C)  lanes [0:WC) = even H row, [WC:2WC) = odd H row
    # sel_ref: (2, W*C, Wo*C)        0/1 lane-compaction (even / odd W)
    # o_ref:   (1, Do, Ho, Wo*C)
    WC = x_ref.shape[3] // 2
    f32 = jnp.float32
    se = sel_ref[0]
    so = sel_ref[1]
    for d in range(Do):
        v = jnp.maximum(x_ref[0, 2 * d], x_ref[0, 2 * d + 1])    # (Ho, 2WC): D pooled
        vh = jnp.maximum(v[:, :WC], v[:, WC:])                   # (Ho, WC):  H pooled
        ve = jnp.dot(vh, se, preferred_element_type=f32)         # exact 0/1 selection
        vo = jnp.dot(vh, so, preferred_element_type=f32)
        out = jnp.maximum(ve, vo)                                 # (Ho, WoC): W pooled
        if apply_act:
            # LeakyReLU commutes with max for slope >= 0, so apply once after pooling.
            out = _leaky(out, slope)
        o_ref[0, d] = out.astype(o_ref.dtype)


def act_maxpool(x, C, *, slope=0.0, apply_act=True):
    """x: (N, D, H, W*C) bf16 -> (N, D/2, H/2, (W/2)*C)."""
    N, D, H, WC = x.shape
    W = WC // C
    assert D % 2 == 0 and H % 2 == 0 and W % 2 == 0
    Do, Ho, Wo = D // 2, H // 2, W // 2
    xr = x.reshape(N, D, Ho, 2 * WC)         # free reshape: adjacent H rows -> lanes
    sel = _pool_select_mats(W, C)
    out = pl.pallas_call(
        functools.partial(_act_pool_kernel, Do=Do, slope=slope, apply_act=apply_act),
        out_shape=jax.ShapeDtypeStruct((N, Do, Ho, Wo * C), x.dtype),
        grid=(N,),
        in_specs=[pl.BlockSpec((1, D, Ho, 2 * WC), lambda n: (n, 0, 0, 0)),
                  pl.BlockSpec((2, WC, Wo * C), lambda n: (0, 0, 0))],
        out_specs=pl.BlockSpec((1, Do, Ho, Wo * C), lambda n: (n, 0, 0, 0)),
        compiler_params=pltpu.CompilerParams(
            dimension_semantics=("parallel",),
            vmem_limit_bytes=_VMEM_LIMIT_BYTES),
    )(xr, sel)
    return out


def pool_mask(mask):
    """2x2x2 max pool of the tiny compact mask (N, D, H, W) in plain XLA."""
    N, D, H, W = mask.shape
    return mask.reshape(N, D // 2, 2, H // 2, 2, W // 2, 2).max(axis=(2, 4, 6))


# ---------------------------------------------------------------------------
# Parameters (deterministic, in-script) and per-layer banded-weight build.
# ---------------------------------------------------------------------------
def _init_conv(key, kd, kh, kw, cin, cout):
    fan_in = kd * kh * kw * cin
    scale = 1.0 / jnp.sqrt(jnp.float32(fan_in))
    return scale * jax.random.normal(key, (kd, kh, kw, cin, cout), jnp.float32)


def init_pyramid_params(key, blocks, layers_per_block, dense_blocks):
    keys = iter(jax.random.split(key, 64))
    params = {}
    c0, k0 = blocks[0]
    params["binary"] = _init_conv(next(keys), k0, k0, k0, 1, c0)

    blk_params = []
    res = []
    for _ in range(layers_per_block):
        res.append(dict(shortcut=None,
                        conv1=_init_conv(next(keys), k0, k0, k0, c0, c0),
                        conv2=_init_conv(next(keys), k0, k0, k0, c0, c0)))
    blk_params.append(dict(res=res))

    prev = c0
    for (c, k) in blocks[1:]:
        res = [dict(
            shortcut=(_init_conv(next(keys), 1, 1, 1, prev, c) if prev != c else None),
            conv1=_init_conv(next(keys), k, k, k, prev, c),
            conv2=_init_conv(next(keys), k, k, k, c, c))]
        for _ in range(layers_per_block - 1):
            res.append(dict(shortcut=None,
                            conv1=_init_conv(next(keys), k, k, k, c, c),
                            conv2=_init_conv(next(keys), k, k, k, c, c)))
        blk_params.append(dict(res=res))
        prev = c
    params["blocks"] = blk_params

    dense = []
    for (c, kern, stride) in dense_blocks:
        kd, kh, kw = kern
        assert stride[1] == 1 and stride[2] == 1
        dense.append(dict(w=_init_conv(next(keys), kd, kh, kw, prev, c),
                          stride_d=stride[0]))
        prev = c
    params["dense"] = dense
    return params


def build_pyramid_plan(params, spatial_shape):
    """Precompute per-layer block-banded bf16 weights (done once, not per forward)."""
    _, _, W = spatial_shape
    cur_W = W
    plan = {"binary": _band_weights(params["binary"], cur_W)}
    blks = []
    for li, blk in enumerate(params["blocks"]):
        if li > 0:
            cur_W //= 2
        res = []
        for rb in blk["res"]:
            res.append(dict(
                shortcut=None if rb["shortcut"] is None
                else _band_weights(rb["shortcut"], cur_W),
                conv1=_band_weights(rb["conv1"], cur_W),
                conv2=_band_weights(rb["conv2"], cur_W)))
        blks.append(res)
    plan["blocks"] = blks
    cur_W //= 2                               # final pool before the dense blocks
    dense = []
    for dblk in params["dense"]:
        dense.append(dict(band=_band_weights(dblk["w"], cur_W),
                          stride_d=dblk["stride_d"]))
    plan["dense"] = dense
    return plan


# ---------------------------------------------------------------------------
# Pyramid forward
# ---------------------------------------------------------------------------
def residual_block(x, mask, rp, W, slope):
    # scn.ConcatTable(Identity / NetworkInNetwork, Act->Conv->Act->Conv) + scn.AddTable,
    # with mask / activations / residual add fused into the conv kernels.
    if rp["shortcut"] is not None:
        # NIN 1x1x1: input is already zero at inactive sites, so no mask multiply needed.
        sc = conv3d_fused(x, rp["shortcut"], W=W)
    else:
        sc = x
    y = conv3d_fused(x, rp["conv1"], W=W, mask=mask, act_in=True, slope=slope)
    return conv3d_fused(y, rp["conv2"], W=W, mask=mask, res=sc, act_in=True, slope=slope)


def pyramid_forward(plan, voxel_features, coors, batch_size, spatial_shape,
                    leakiness=0.0):
    # scn.InputLayer: scatter sparse voxels into a dense grid + compact active mask.
    D, H, W = spatial_shape
    C_in = voxel_features.shape[-1]
    b, z, y, xw = coors[:, 0], coors[:, 1], coors[:, 2], coors[:, 3]
    dense5 = jnp.zeros((batch_size, D, H, W, C_in), ACT_DTYPE)
    dense5 = dense5.at[b, z, y, xw, :].set(voxel_features.astype(ACT_DTYPE))
    x = dense5.reshape(batch_size, D, H, W * C_in)
    mask = jnp.zeros((batch_size, D, H, W), ACT_DTYPE)
    mask = mask.at[b, z, y, xw].set(1.0)

    cur_W = W
    # binary_processor: SubmanifoldConvolution(1 -> c0, no bias), masked output.
    x = conv3d_fused(x, plan["binary"], W=cur_W, mask=mask)
    cur_C = plan["binary"].shape[3] // cur_W

    for li, blk in enumerate(plan["blocks"]):
        if li > 0:
            # BatchNormLeakyReLU (BN == identity with eval stats) + MaxPool(2,2,2)
            x = act_maxpool(x, C=cur_C, slope=leakiness, apply_act=True)
            mask = pool_mask(mask)
            cur_W //= 2
        for rb in blk:
            x = residual_block(x, mask, rb, cur_W, leakiness)
            cur_C = rb["conv2"].shape[3] // cur_W

    # final block_model: BatchNormLeakyReLU -> MaxPool
    x = act_maxpool(x, C=cur_C, slope=leakiness, apply_act=True)
    cur_W //= 2

    # sparse_to_dense: x already is the dense tensor (zeros at inactive sites)

    # dense blocks: Conv3d(k, stride=(s,1,1), pad=(k-1)//2, bias=False) + LeakyReLU
    for dblk in plan["dense"]:
        x = conv3d_fused(x, dblk["band"], W=cur_W, stride_d=dblk["stride_d"],
                         act_out=True, slope=leakiness)
        cur_C = dblk["band"].shape[3] // cur_W

    # (N, D, H, W*C) -> NCDHW -> view(N, C*D, H, W)  (matches PyTorch's ret.view)
    N, Do, Ho, _ = x.shape
    x = x.astype(jnp.float32).reshape(N, Do, Ho, cur_W, cur_C)
    x = jnp.transpose(x, (0, 4, 1, 2, 3))
    return x.reshape(N, cur_C * Do, Ho, cur_W)


# ---------------------------------------------------------------------------
# Demo
# ---------------------------------------------------------------------------
if __name__ == "__main__":
    key = jax.random.PRNGKey(0)

    # Small configuration consistent with the module's parameterization.
    blocks = [(8, 3), (16, 3)]
    layers_per_block = 1
    dense_blocks = [(32, (3, 3, 3), (2, 1, 1))]
    batch_size = 2
    spatial_shape = (4, 16, 16)          # == output_shape[1:4] in the original
    leakiness = 0.0

    pkey, fkey, ckey = jax.random.split(key, 3)
    params = init_pyramid_params(pkey, blocks, layers_per_block, dense_blocks)
    plan = build_pyramid_plan(params, spatial_shape)   # banded bf16 weights, built once

    # Sparse voxel input: unique coordinates per batch element.
    D, H, W = spatial_shape
    n_vox = 20
    flat = jax.random.permutation(ckey, D * H * W)[:n_vox].astype(jnp.int32)
    zz = flat // (H * W)
    rem = flat % (H * W)
    yy = rem // W
    ww = rem % W
    coors_list = []
    for bidx in range(batch_size):
        bcol = jnp.full((n_vox,), bidx, jnp.int32)
        coors_list.append(jnp.stack([bcol, zz, yy, ww], axis=1))
    coors = jnp.concatenate(coors_list, axis=0)                   # [V, 4] (b, z, y, x)
    voxel_features = jax.random.normal(fkey, (coors.shape[0], 1), jnp.float32)

    out = pyramid_forward(plan, voxel_features, coors, batch_size,
                          spatial_shape, leakiness)
    out = jax.block_until_ready(out)

    # Expected shape: two pools + dense depth-stride-2 conv -> (N, 32*1, 4, 4)
    assert out.shape == (batch_size, 32 * 1, 4, 4), out.shape
    assert bool(jnp.all(jnp.isfinite(out)))
    print("KERNEL_OK")
</pallas_src>

<mosaic_0001>
module attributes {stable_mosaic.version = 11 : i64} {
  func.func @_conv_kernel(%arg0: i32, %arg1: memref<1x4x16x16xbf16, #tpu.memory_space<vmem>>, %arg2: memref<3x3x16x128xbf16, #tpu.memory_space<vmem>>, %arg3: memref<16x128xbf16, #tpu.memory_space<vmem>>, %arg4: memref<1x4x16x16xbf16, #tpu.memory_space<vmem>>, %arg5: memref<1x4x16x128xbf16, #tpu.memory_space<vmem>>, %arg6: memref<144x16xbf16, #tpu.memory_space<vmem>>, %arg7: memref<88x128xf32, #tpu.memory_space<vmem>>) attributes {dimension_semantics = [#tpu.dimension_semantics<parallel>], iteration_bounds = array<i64: 2>, scalar_prefetch = 0 : i64, scratch_operands = 2 : i64, tpu.core_type = #tpu.core_type<tc>, window_params = [{transform_indices = @transform_0, window_bounds = array<i64: 1, 4, 16, 16>}, {pipeline_mode = #tpu.pipeline_mode<synchronous>, transform_indices = @transform_1, window_bounds = array<i64: 3, 3, 16, 128>}, {pipeline_mode = #tpu.pipeline_mode<synchronous>, transform_indices = @transform_2, window_bounds = array<i64: 16, 128>}, {transform_indices = @transform_3, window_bounds = array<i64: 1, 4, 16, 16>}, {transform_indices = @transform_4, window_bounds = array<i64: 1, 4, 16, 128>}]} {
    %cst = arith.constant 0.000000e+00 : bf16
    %0 = vector.broadcast %cst : bf16 to vector<25x16xbf16>
    %c0 = arith.constant 0 : index
    %c0_0 = arith.constant 0 : index
    %1 = vector.load %arg6[%c0, %c0_0] : memref<144x16xbf16, #tpu.memory_space<vmem>>, vector<25x16xbf16>
    tpu.vector_store %arg6[%c0, %c0_0], %0 {strides = array<i32>} : memref<144x16xbf16, #tpu.memory_space<vmem>>, vector<25x16xbf16>,
    %cst_1 = arith.constant 0.000000e+00 : bf16
    %2 = vector.broadcast %cst_1 : bf16 to vector<8x16xbf16>
    %c41 = arith.constant 41 : index
    %c0_2 = arith.constant 0 : index
    %3 = vector.load %arg6[%c41, %c0_2] : memref<144x16xbf16, #tpu.memory_space<vmem>>, vector<8x16xbf16>
    tpu.vector_store %arg6[%c41, %c0_2], %2 {strides = array<i32>} : memref<144x16xbf16, #tpu.memory_space<vmem>>, vector<8x16xbf16>,
    %c65 = arith.constant 65 : index
    %c0_3 = arith.constant 0 : index
    %4 = vector.load %arg6[%c65, %c0_3] : memref<144x16xbf16, #tpu.memory_space<vmem>>, vector<8x16xbf16>
    tpu.vector_store %arg6[%c65, %c0_3], %2 {strides = array<i32>} : memref<144x16xbf16, #tpu.memory_space<vmem>>, vector<8x16xbf16>,
    %c89 = arith.constant 89 : index
    %c0_4 = arith.constant 0 : index
    %5 = vector.load %arg6[%c89, %c0_4] : memref<144x16xbf16, #tpu.memory_space<vmem>>, vector<8x16xbf16>
    tpu.vector_store %arg6[%c89, %c0_4], %2 {strides = array<i32>} : memref<144x16xbf16, #tpu.memory_space<vmem>>, vector<8x16xbf16>,
    %cst_5 = arith.constant 0.000000e+00 : bf16
    %6 = vector.broadcast %cst_5 : bf16 to vector<31x16xbf16>
    %c113 = arith.constant 113 : index
    %c0_6 = arith.constant 0 : index
    %7 = vector.load %arg6[%c113, %c0_6] : memref<144x16xbf16, #tpu.memory_space<vmem>>, vector<31x16xbf16>
    tpu.vector_store %arg6[%c113, %c0_6], %6 {strides = array<i32>} : memref<144x16xbf16, #tpu.memory_space<vmem>>, vector<31x16xbf16>,
    %c0_7 = arith.constant 0 : index
    %c0_8 = arith.constant 0 : index
    %c0_9 = arith.constant 0 : index
    %c0_10 = arith.constant 0 : index
    %8 = vector.load %arg1[%c0_7, %c0_8, %c0_9, %c0_10] : memref<1x4x16x16xbf16, #tpu.memory_space<vmem>>, vector<1x1x16x16xbf16>
    %9 = vector.shape_cast %8 : vector<1x1x16x16xbf16> to vector<16x16xbf16>
    %c25 = arith.constant 25 : index
    %c0_11 = arith.constant 0 : index
    %10 = vector.load %arg6[%c25, %c0_11] : memref<144x16xbf16, #tpu.memory_space<vmem>>, vector<16x16xbf16>
    tpu.vector_store %arg6[%c25, %c0_11], %9 {strides = array<i32>} : memref<144x16xbf16, #tpu.memory_space<vmem>>, vector<16x16xbf16>,
    %c0_12 = arith.constant 0 : index
    %c1 = arith.constant 1 : index
    %c0_13 = arith.constant 0 : index
    %c0_14 = arith.constant 0 : index
    %11 = vector.load %arg1[%c0_12, %c1, %c0_13, %c0_14] : memref<1x4x16x16xbf16, #tpu.memory_space<vmem>>, vector<1x1x16x16xbf16>
    %12 = vector.shape_cast %11 : vector<1x1x16x16xbf16> to vector<16x16xbf16>
    %c49 = arith.constant 49 : index
    %c0_15 = arith.constant 0 : index
    %13 = vector.load %arg6[%c49, %c0_15] : memref<144x16xbf16, #tpu.memory_space<vmem>>, vector<16x16xbf16>
    tpu.vector_store %arg6[%c49, %c0_15], %12 {strides = array<i32>} : memref<144x16xbf16, #tpu.memory_space<vmem>>, vector<16x16xbf16>,
    %c0_16 = arith.constant 0 : index
    %c2 = arith.constant 2 : index
    %c0_17 = arith.constant 0 : index
    %c0_18 = arith.constant 0 : index
    %14 = vector.load %arg1[%c0_16, %c2, %c0_17, %c0_18] : memref<1x4x16x16xbf16, #tpu.memory_space<vmem>>, vector<1x1x16x16xbf16>
    %15 = vector.shape_cast %14 : vector<1x1x16x16xbf16> to vector<16x16xbf16>
    %c73 = arith.constant 73 : index
    %c0_19 = arith.constant 0 : index
    %16 = vector.load %arg6[%c73, %c0_19] : memref<144x16xbf16, #tpu.memory_space<vmem>>, vector<16x16xbf16>
    tpu.vector_store %arg6[%c73, %c0_19], %15 {strides = array<i32>} : memref<144x16xbf16, #tpu.memory_space<vmem>>, vector<16x16xbf16>,
    %c0_20 = arith.constant 0 : index
    %c3 = arith.constant 3 : index
    %c0_21 = arith.constant 0 : index
    %c0_22 = arith.constant 0 : index
    %17 = vector.load %arg1[%c0_20, %c3, %c0_21, %c0_22] : memref<1x4x16x16xbf16, #tpu.memory_space<vmem>>, vector<1x1x16x16xbf16>
    %18 = vector.shape_cast %17 : vector<1x1x16x16xbf16> to vector<16x16xbf16>
    %c97 = arith.constant 97 : index
    %c0_23 = arith.constant 0 : index
    %19 = vector.load %arg6[%c97, %c0_23] : memref<144x16xbf16, #tpu.memory_space<vmem>>, vector<16x16xbf16>
    tpu.vector_store %arg6[%c97, %c0_23], %18 {strides = array<i32>} : memref<144x16xbf16, #tpu.memory_space<vmem>>, vector<16x16xbf16>,
    %c0_24 = arith.constant 0 : index
    %c0_25 = arith.constant 0 : index
    %20 = vector.load %arg6[%c0_24, %c0_25] : memref<144x16xbf16, #tpu.memory_space<vmem>>, vector<88x16xbf16>
    %c0_26 = arith.constant 0 : index
    %c0_27 = arith.constant 0 : index
    %c0_28 = arith.constant 0 : index
    %c0_29 = arith.constant 0 : index
    %21 = vector.load %arg2[%c0_26, %c0_27, %c0_28, %c0_29] : memref<3x3x16x128xbf16, #tpu.memory_space<vmem>>, vector<1x1x16x128xbf16>
    %22 = vector.shape_cast %21 : vector<1x1x16x128xbf16> to vector<16x128xbf16>
    %cst_30 = arith.constant dense<0.000000e+00> : vector<88x128xf32>
    %23 = tpu.matmul %20, %22, %cst_30 {dimension_numbers = #tpu.dot_dimension_numbers<[1], [0], [0], [1], [0, 0, 1, 1], [], []>} : vector<88x16xbf16>, vector<16x128xbf16>, vector<88x128xf32> -> vector<88x128xf32>
    %c0_31 = arith.constant 0 : index
    %c0_32 = arith.constant 0 : index
    %24 = vector.load %arg7[%c0_31, %c0_32] : memref<88x128xf32, #tpu.memory_space<vmem>>, vector<88x128xf32>
    tpu.vector_store %arg7[%c0_31, %c0_32], %23 {strides = array<i32>} : memref<88x128xf32, #tpu.memory_space<vmem>>, vector<88x128xf32>,
    %c1_33 = arith.constant 1 : index
    %c0_34 = arith.constant 0 : index
    %25 = vector.load %arg6[%c1_33, %c0_34] : memref<144x16xbf16, #tpu.memory_space<vmem>>, vector<88x16xbf16>
    %c0_35 = arith.constant 0 : index
    %c1_36 = arith.constant 1 : index
    %c0_37 = arith.constant 0 : index
    %c0_38 = arith.constant 0 : index
    %26 = vector.load %arg2[%c0_35, %c1_36, %c0_37, %c0_38] : memref<3x3x16x128xbf16, #tpu.memory_space<vmem>>, vector<1x1x16x128xbf16>
    %27 = vector.shape_cast %26 : vector<1x1x16x128xbf16> to vector<16x128xbf16>
    %cst_39 = arith.constant dense<0.000000e+00> : vector<88x128xf32>
    %28 = tpu.matmul %25, %27, %cst_39 {dimension_numbers = #tpu.dot_dimension_numbers<[1], [0], [0], [1], [0, 0, 1, 1], [], []>} : vector<88x16xbf16>, vector<16x128xbf16>, vector<88x128xf32> -> vector<88x128xf32>
    %c0_40 = arith.constant 0 : index
    %c0_41 = arith.constant 0 : index
    %29 = vector.load %arg7[%c0_40, %c0_41] : memref<88x128xf32, #tpu.memory_space<vmem>>, vector<88x128xf32>
    %30 = arith.addf %29, %28 : vector<88x128xf32>
    %c0_42 = arith.constant 0 : index
    %c0_43 = arith.constant 0 : index
    %31 = vector.load %arg7[%c0_42, %c0_43] : memref<88x128xf32, #tpu.memory_space<vmem>>, vector<88x128xf32>
    tpu.vector_store %arg7[%c0_42, %c0_43], %30 {strides = array<i32>} : memref<88x128xf32, #tpu.memory_space<vmem>>, vector<88x128xf32>,
    %c2_44 = arith.constant 2 : index
    %c0_45 = arith.constant 0 : index
    %32 = vector.load %arg6[%c2_44, %c0_45] : memref<144x16xbf16, #tpu.memory_space<vmem>>, vector<88x16xbf16>
    %c0_46 = arith.constant 0 : index
    %c2_47 = arith.constant 2 : index
    %c0_48 = arith.constant 0 : index
    %c0_49 = arith.constant 0 : index
    %33 = vector.load %arg2[%c0_46, %c2_47, %c0_48, %c0_49] : memref<3x3x16x128xbf16, #tpu.memory_space<vmem>>, vector<1x1x16x128xbf16>
    %34 = vector.shape_cast %33 : vector<1x1x16x128xbf16> to vector<16x128xbf16>
    %cst_50 = arith.constant dense<0.000000e+00> : vector<88x128xf32>
    %35 = tpu.matmul %32, %34, %cst_50 {dimension_numbers = #tpu.dot_dimension_numbers<[1], [0], [0], [1], [0, 0, 1, 1], [], []>} : vector<88x16xbf16>, vector<16x128xbf16>, vector<88x128xf32> -> vector<88x128xf32>
    %c0_51 = arith.constant 0 : index
    %c0_52 = arith.constant 0 : index
    %36 = vector.load %arg7[%c0_51, %c0_52] : memref<88x128xf32, #tpu.memory_space<vmem>>, vector<88x128xf32>
    %37 = arith.addf %36, %35 : vector<88x128xf32>
    %c0_53 = arith.constant 0 : index
    %c0_54 = arith.constant 0 : index
    %38 = vector.load %arg7[%c0_53, %c0_54] : memref<88x128xf32, #tpu.memory_space<vmem>>, vector<88x128xf32>
    tpu.vector_store %arg7[%c0_53, %c0_54], %37 {strides = array<i32>} : memref<88x128xf32, #tpu.memory_space<vmem>>, vector<88x128xf32>,
    %c24 = arith.constant 24 : index
    %c0_55 = arith.constant 0 : index
    %39 = vector.load %arg6[%c24, %c0_55] : memref<144x16xbf16, #tpu.memory_space<vmem>>, vector<88x16xbf16>
    %c1_56 = arith.constant 1 : index
    %c0_57 = arith.constant 0 : index
    %c0_58 = arith.constant 0 : index
    %c0_59 = arith.constant 0 : index
    %40 = vector.load %arg2[%c1_56, %c0_57, %c0_58, %c0_59] : memref<3x3x16x128xbf16, #tpu.memory_space<vmem>>, vector<1x1x16x128xbf16>
    %41 = vector.shape_cast %40 : vector<1x1x16x128xbf16> to vector<16x128xbf16>
    %cst_60 = arith.constant dense<0.000000e+00> : vector<88x128xf32>
    %42 = tpu.matmul %39, %41, %cst_60 {dimension_numbers = #tpu.dot_dimension_numbers<[1], [0], [0], [1], [0, 0, 1, 1], [], []>} : vector<88x16xbf16>, vector<16x128xbf16>, vector<88x128xf32> -> vector<88x128xf32>
    %c0_61 = arith.constant 0 : index
    %c0_62 = arith.constant 0 : index
    %43 = vector.load %arg7[%c0_61, %c0_62] : memref<88x128xf32, #tpu.memory_space<vmem>>, vector<88x128xf32>
    %44 = arith.addf %43, %42 : vector<88x128xf32>
    %c0_63 = arith.constant 0 : index
    %c0_64 = arith.constant 0 : index
    %45 = vector.load %arg7[%c0_63, %c0_64] : memref<88x128xf32, #tpu.memory_space<vmem>>, vector<88x128xf32>
    tpu.vector_store %arg7[%c0_63, %c0_64], %44 {strides = array<i32>} : memref<88x128xf32, #tpu.memory_space<vmem>>, vector<88x128xf32>,
    %c25_65 = arith.constant 25 : index
    %c0_66 = arith.constant 0 : index
    %46 = vector.load %arg6[%c25_65, %c0_66] : memref<144x16xbf16, #tpu.memory_space<vmem>>, vector<88x16xbf16>
    %c1_67 = arith.constant 1 : index
    %c1_68 = arith.constant 1 : index
    %c0_69 = arith.constant 0 : index
    %c0_70 = arith.constant 0 : index
    %47 = vector.load %arg2[%c1_67, %c1_68, %c0_69, %c0_70] : memref<3x3x16x128xbf16, #tpu.memory_space<vmem>>, vector<1x1x16x128xbf16>
    %48 = vector.shape_cast %47 : vector<1x1x16x128xbf16> to vector<16x128xbf16>
    %cst_71 = arith.constant dense<0.000000e+00> : vector<88x128xf32>
    %49 = tpu.matmul %46, %48, %cst_71 {dimension_numbers = #tpu.dot_dimension_numbers<[1], [0], [0], [1], [0, 0, 1, 1], [], []>} : vector<88x16xbf16>, vector<16x128xbf16>, vector<88x128xf32> -> vector<88x128xf32>
    %c0_72 = arith.constant 0 : index
    %c0_73 = arith.constant 0 : index
    %50 = vector.load %arg7[%c0_72, %c0_73] : memref<88x128xf32, #tpu.memory_space<vmem>>, vector<88x128xf32>
    %51 = arith.addf %50, %49 : vector<88x128xf32>
    %c0_74 = arith.constant 0 : index
    %c0_75 = arith.constant 0 : index
    %52 = vector.load %arg7[%c0_74, %c0_75] : memref<88x128xf32, #tpu.memory_space<vmem>>, vector<88x128xf32>
    tpu.vector_store %arg7[%c0_74, %c0_75], %51 {strides = array<i32>} : memref<88x128xf32, #tpu.memory_space<vmem>>, vector<88x128xf32>,
    %c26 = arith.constant 26 : index
    %c0_76 = arith.constant 0 : index
    %53 = vector.load %arg6[%c26, %c0_76] : memref<144x16xbf16, #tpu.memory_space<vmem>>, vector<88x16xbf16>
    %c1_77 = arith.constant 1 : index
    %c2_78 = arith.constant 2 : index
    %c0_79 = arith.constant 0 : index
    %c0_80 = arith.constant 0 : index
    %54 = vector.load %arg2[%c1_77, %c2_78, %c0_79, %c0_80] : memref<3x3x16x128xbf16, #tpu.memory_space<vmem>>, vector<1x1x16x128xbf16>
    %55 = vector.shape_cast %54 : vector<1x1x16x128xbf16> to vector<16x128xbf16>
    %cst_81 = arith.constant dense<0.000000e+00> : vector<88x128xf32>
    %56 = tpu.matmul %53, %55, %cst_81 {dimension_numbers = #tpu.dot_dimension_numbers<[1], [0], [0], [1], [0, 0, 1, 1], [], []>} : vector<88x16xbf16>, vector<16x128xbf16>, vector<88x128xf32> -> vector<88x128xf32>
    %c0_82 = arith.constant 0 : index
    %c0_83 = arith.constant 0 : index
    %57 = vector.load %arg7[%c0_82, %c0_83] : memref<88x128xf32, #tpu.memory_space<vmem>>, vector<88x128xf32>
    %58 = arith.addf %57, %56 : vector<88x128xf32>
    %c0_84 = arith.constant 0 : index
    %c0_85 = arith.constant 0 : index
    %59 = vector.load %arg7[%c0_84, %c0_85] : memref<88x128xf32, #tpu.memory_space<vmem>>, vector<88x128xf32>
    tpu.vector_store %arg7[%c0_84, %c0_85], %58 {strides = array<i32>} : memref<88x128xf32, #tpu.memory_space<vmem>>, vector<88x128xf32>,
    %c48 = arith.constant 48 : index
    %c0_86 = arith.constant 0 : index
    %60 = vector.load %arg6[%c48, %c0_86] : memref<144x16xbf16, #tpu.memory_space<vmem>>, vector<88x16xbf16>
    %c2_87 = arith.constant 2 : index
    %c0_88 = arith.constant 0 : index
    %c0_89 = arith.constant 0 : index
    %c0_90 = arith.constant 0 : index
    %61 = vector.load %arg2[%c2_87, %c0_88, %c0_89, %c0_90] : memref<3x3x16x128xbf16, #tpu.memory_space<vmem>>, vector<1x1x16x128xbf16>
    %62 = vector.shape_cast %61 : vector<1x1x16x128xbf16> to vector<16x128xbf16>
    %cst_91 = arith.constant dense<0.000000e+00> : vector<88x128xf32>
    %63 = tpu.matmul %60, %62, %cst_91 {dimension_numbers = #tpu.dot_dimension_numbers<[1], [0], [0], [1], [0, 0, 1, 1], [], []>} : vector<88x16xbf16>, vector<16x128xbf16>, vector<88x128xf32> -> vector<88x128xf32>
    %c0_92 = arith.constant 0 : index
    %c0_93 = arith.constant 0 : index
    %64 = vector.load %arg7[%c0_92, %c0_93] : memref<88x128xf32, #tpu.memory_space<vmem>>, vector<88x128xf32>
    %65 = arith.addf %64, %63 : vector<88x128xf32>
    %c0_94 = arith.constant 0 : index
    %c0_95 = arith.constant 0 : index
    %66 = vector.load %arg7[%c0_94, %c0_95] : memref<88x128xf32, #tpu.memory_space<vmem>>, vector<88x128xf32>
    tpu.vector_store %arg7[%c0_94, %c0_95], %65 {strides = array<i32>} : memref<88x128xf32, #tpu.memory_space<vmem>>, vector<88x128xf32>,
    %c49_96 = arith.constant 49 : index
    %c0_97 = arith.constant 0 : index
    %67 = vector.load %arg6[%c49_96, %c0_97] : memref<144x16xbf16, #tpu.memory_space<vmem>>, vector<88x16xbf16>
    %c2_98 = arith.constant 2 : index
    %c1_99 = arith.constant 1 : index
    %c0_100 = arith.constant 0 : index
    %c0_101 = arith.constant 0 : index
    %68 = vector.load %arg2[%c2_98, %c1_99, %c0_100, %c0_101] : memref<3x3x16x128xbf16, #tpu.memory_space<vmem>>, vector<1x1x16x128xbf16>
    %69 = vector.shape_cast %68 : vector<1x1x16x128xbf16> to vector<16x128xbf16>
    %cst_102 = arith.constant dense<0.000000e+00> : vector<88x128xf32>
    %70 = tpu.matmul %67, %69, %cst_102 {dimension_numbers = #tpu.dot_dimension_numbers<[1], [0], [0], [1], [0, 0, 1, 1], [], []>} : vector<88x16xbf16>, vector<16x128xbf16>, vector<88x128xf32> -> vector<88x128xf32>
    %c0_103 = arith.constant 0 : index
    %c0_104 = arith.constant 0 : index
    %71 = vector.load %arg7[%c0_103, %c0_104] : memref<88x128xf32, #tpu.memory_space<vmem>>, vector<88x128xf32>
    %72 = arith.addf %71, %70 : vector<88x128xf32>
    %c0_105 = arith.constant 0 : index
    %c0_106 = arith.constant 0 : index
    %73 = vector.load %arg7[%c0_105, %c0_106] : memref<88x128xf32, #tpu.memory_space<vmem>>, vector<88x128xf32>
    tpu.vector_store %arg7[%c0_105, %c0_106], %72 {strides = array<i32>} : memref<88x128xf32, #tpu.memory_space<vmem>>, vector<88x128xf32>,
    %c50 = arith.constant 50 : index
    %c0_107 = arith.constant 0 : index
    %74 = vector.load %arg6[%c50, %c0_107] : memref<144x16xbf16, #tpu.memory_space<vmem>>, vector<88x16xbf16>
    %c2_108 = arith.constant 2 : index
    %c2_109 = arith.constant 2 : index
    %c0_110 = arith.constant 0 : index
    %c0_111 = arith.constant 0 : index
    %75 = vector.load %arg2[%c2_108, %c2_109, %c0_110, %c0_111] : memref<3x3x16x128xbf16, #tpu.memory_space<vmem>>, vector<1x1x16x128xbf16>
    %76 = vector.shape_cast %75 : vector<1x1x16x128xbf16> to vector<16x128xbf16>
    %cst_112 = arith.constant dense<0.000000e+00> : vector<88x128xf32>
    %77 = tpu.matmul %74, %76, %cst_112 {dimension_numbers = #tpu.dot_dimension_numbers<[1], [0], [0], [1], [0, 0, 1, 1], [], []>} : vector<88x16xbf16>, vector<16x128xbf16>, vector<88x128xf32> -> vector<88x128xf32>
    %c0_113 = arith.constant 0 : index
    %c0_114 = arith.constant 0 : index
    %78 = vector.load %arg7[%c0_113, %c0_114] : memref<88x128xf32, #tpu.memory_space<vmem>>, vector<88x128xf32>
    %79 = arith.addf %78, %77 : vector<88x128xf32>
    %c0_115 = arith.constant 0 : index
    %c0_116 = arith.constant 0 : index
    %80 = vector.load %arg7[%c0_115, %c0_116] : memref<88x128xf32, #tpu.memory_space<vmem>>, vector<88x128xf32>
    tpu.vector_store %arg7[%c0_115, %c0_116], %79 {strides = array<i32>} : memref<88x128xf32, #tpu.memory_space<vmem>>, vector<88x128xf32>,
    %c0_117 = arith.constant 0 : index
    %c0_118 = arith.constant 0 : index
    %81 = vector.load %arg7[%c0_117, %c0_118] : memref<88x128xf32, #tpu.memory_space<vmem>>, vector<16x128xf32>
    %c0_119 = arith.constant 0 : index
    %c0_120 = arith.constant 0 : index
    %c0_121 = arith.constant 0 : index
    %c0_122 = arith.constant 0 : index
    %82 = vector.load %arg4[%c0_119, %c0_120, %c0_121, %c0_122] : memref<1x4x16x16xbf16, #tpu.memory_space<vmem>>, vector<1x1x16x16xbf16>
    %83 = vector.shape_cast %82 : vector<1x1x16x16xbf16> to vector<16x16xbf16>
    %c0_123 = arith.constant 0 : index
    %c0_124 = arith.constant 0 : index
    %84 = vector.load %arg3[%c0_123, %c0_124] : memref<16x128xbf16, #tpu.memory_space<vmem>>, vector<16x128xbf16>
    %cst_125 = arith.constant dense<0.000000e+00> : vector<16x128xf32>
    %85 = tpu.matmul %83, %84, %cst_125 {dimension_numbers = #tpu.dot_dimension_numbers<[1], [0], [0], [1], [0, 0, 1, 1], [], []>} : vector<16x16xbf16>, vector<16x128xbf16>, vector<16x128xf32> -> vector<16x128xf32>
    %86 = arith.mulf %81, %85 : vector<16x128xf32>
    %87 = arith.truncf %86 : vector<16x128xf32> to vector<16x128xbf16>
    %c0_126 = arith.constant 0 : index
    %c0_127 = arith.constant 0 : index
    %c0_128 = arith.constant 0 : index
    %c0_129 = arith.constant 0 : index
    %88 = vector.load %arg5[%c0_126, %c0_127, %c0_128, %c0_129] : memref<1x4x16x128xbf16, #tpu.memory_space<vmem>>, vector<1x1x16x128xbf16>
    %89 = vector.shape_cast %88 : vector<1x1x16x128xbf16> to vector<16x128xbf16>
    %90 = vector.shape_cast %87 : vector<16x128xbf16> to vector<1x1x16x128xbf16>
    tpu.vector_store %arg5[%c0_126, %c0_127, %c0_128, %c0_129], %90 {strides = array<i32>} : memref<1x4x16x128xbf16, #tpu.memory_space<vmem>>, vector<1x1x16x128xbf16>,
    %c24_130 = arith.constant 24 : index
    %c0_131 = arith.constant 0 : index
    %91 = vector.load %arg7[%c24_130, %c0_131] : memref<88x128xf32, #tpu.memory_space<vmem>>, vector<16x128xf32>
    %c0_132 = arith.constant 0 : index
    %c1_133 = arith.constant 1 : index
    %c0_134 = arith.constant 0 : index
    %c0_135 = arith.constant 0 : index
    %92 = vector.load %arg4[%c0_132, %c1_133, %c0_134, %c0_135] : memref<1x4x16x16xbf16, #tpu.memory_space<vmem>>, vector<1x1x16x16xbf16>
    %93 = vector.shape_cast %92 : vector<1x1x16x16xbf16> to vector<16x16xbf16>
    %c0_136 = arith.constant 0 : index
    %c0_137 = arith.constant 0 : index
    %94 = vector.load %arg3[%c0_136, %c0_137] : memref<16x128xbf16, #tpu.memory_space<vmem>>, vector<16x128xbf16>
    %cst_138 = arith.constant dense<0.000000e+00> : vector<16x128xf32>
    %95 = tpu.matmul %93, %94, %cst_138 {dimension_numbers = #tpu.dot_dimension_numbers<[1], [0], [0], [1], [0, 0, 1, 1], [], []>} : vector<16x16xbf16>, vector<16x128xbf16>, vector<16x128xf32> -> vector<16x128xf32>
    %96 = arith.mulf %91, %95 : vector<16x128xf32>
    %97 = arith.truncf %96 : vector<16x128xf32> to vector<16x128xbf16>
    %c0_139 = arith.constant 0 : index
    %c1_140 = arith.constant 1 : index
    %c0_141 = arith.constant 0 : index
    %c0_142 = arith.constant 0 : index
    %98 = vector.load %arg5[%c0_139, %c1_140, %c0_141, %c0_142] : memref<1x4x16x128xbf16, #tpu.memory_space<vmem>>, vector<1x1x16x128xbf16>
    %99 = vector.shape_cast %98 : vector<1x1x16x128xbf16> to vector<16x128xbf16>
    %100 = vector.shape_cast %97 : vector<16x128xbf16> to vector<1x1x16x128xbf16>
    tpu.vector_store %arg5[%c0_139, %c1_140, %c0_141, %c0_142], %100 {strides = array<i32>} : memref<1x4x16x128xbf16, #tpu.memory_space<vmem>>, vector<1x1x16x128xbf16>,
    %c48_143 = arith.constant 48 : index
    %c0_144 = arith.constant 0 : index
    %101 = vector.load %arg7[%c48_143, %c0_144] : memref<88x128xf32, #tpu.memory_space<vmem>>, vector<16x128xf32>
    %c0_145 = arith.constant 0 : index
    %c2_146 = arith.constant 2 : index
    %c0_147 = arith.constant 0 : index
    %c0_148 = arith.constant 0 : index
    %102 = vector.load %arg4[%c0_145, %c2_146, %c0_147, %c0_148] : memref<1x4x16x16xbf16, #tpu.memory_space<vmem>>, vector<1x1x16x16xbf16>
    %103 = vector.shape_cast %102 : vector<1x1x16x16xbf16> to vector<16x16xbf16>
    %c0_149 = arith.constant 0 : index
    %c0_150 = arith.constant 0 : index
    %104 = vector.load %arg3[%c0_149, %c0_150] : memref<16x128xbf16, #tpu.memory_space<vmem>>, vector<16x128xbf16>
    %cst_151 = arith.constant dense<0.000000e+00> : vector<16x128xf32>
    %105 = tpu.matmul %103, %104, %cst_151 {dimension_numbers = #tpu.dot_dimension_numbers<[1], [0], [0], [1], [0, 0, 1, 1], [], []>} : vector<16x16xbf16>, vector<16x128xbf16>, vector<16x128xf32> -> vector<16x128xf32>
    %106 = arith.mulf %101, %105 : vector<16x128xf32>
    %107 = arith.truncf %106 : vector<16x128xf32> to vector<16x128xbf16>
    %c0_152 = arith.constant 0 : index
    %c2_153 = arith.constant 2 : index
    %c0_154 = arith.constant 0 : index
    %c0_155 = arith.constant 0 : index
    %108 = vector.load %arg5[%c0_152, %c2_153, %c0_154, %c0_155] : memref<1x4x16x128xbf16, #tpu.memory_space<vmem>>, vector<1x1x16x128xbf16>
    %109 = vector.shape_cast %108 : vector<1x1x16x128xbf16> to vector<16x128xbf16>
    %110 = vector.shape_cast %107 : vector<16x128xbf16> to vector<1x1x16x128xbf16>
    tpu.vector_store %arg5[%c0_152, %c2_153, %c0_154, %c0_155], %110 {strides = array<i32>} : memref<1x4x16x128xbf16, #tpu.memory_space<vmem>>, vector<1x1x16x128xbf16>,
    %c72 = arith.constant 72 : index
    %c0_156 = arith.constant 0 : index
    %111 = vector.load %arg7[%c72, %c0_156] : memref<88x128xf32, #tpu.memory_space<vmem>>, vector<16x128xf32>
    %c0_157 = arith.constant 0 : index
    %c3_158 = arith.constant 3 : index
    %c0_159 = arith.constant 0 : index
    %c0_160 = arith.constant 0 : index
    %112 = vector.load %arg4[%c0_157, %c3_158, %c0_159, %c0_160] : memref<1x4x16x16xbf16, #tpu.memory_space<vmem>>, vector<1x1x16x16xbf16>
    %113 = vector.shape_cast %112 : vector<1x1x16x16xbf16> to vector<16x16xbf16>
    %c0_161 = arith.constant 0 : index
    %c0_162 = arith.constant 0 : index
    %114 = vector.load %arg3[%c0_161, %c0_162] : memref<16x128xbf16, #tpu.memory_space<vmem>>, vector<16x128xbf16>
    %cst_163 = arith.constant dense<0.000000e+00> : vector<16x128xf32>
    %115 = tpu.matmul %113, %114, %cst_163 {dimension_numbers = #tpu.dot_dimension_numbers<[1], [0], [0], [1], [0, 0, 1, 1], [], []>} : vector<16x16xbf16>, vector<16x128xbf16>, vector<16x128xf32> -> vector<16x128xf32>
    %116 = arith.mulf %111, %115 : vector<16x128xf32>
    %117 = arith.truncf %116 : vector<16x128xf32> to vector<16x128xbf16>
    %c0_164 = arith.constant 0 : index
    %c3_165 = arith.constant 3 : index
    %c0_166 = arith.constant 0 : index
    %c0_167 = arith.constant 0 : index
    %118 = vector.load %arg5[%c0_164, %c3_165, %c0_166, %c0_167] : memref<1x4x16x128xbf16, #tpu.memory_space<vmem>>, vector<1x1x16x128xbf16>
    %119 = vector.shape_cast %118 : vector<1x1x16x128xbf16> to vector<16x128xbf16>
    %120 = vector.shape_cast %117 : vector<16x128xbf16> to vector<1x1x16x128xbf16>
    tpu.vector_store %arg5[%c0_164, %c3_165, %c0_166, %c0_167], %120 {strides = array<i32>} : memref<1x4x16x128xbf16, #tpu.memory_space<vmem>>, vector<1x1x16x128xbf16>,
    return
  }
  func.func @transform_0(%arg0: i32) -> (i32, i32, i32, i32) {
    %c0_i32 = arith.constant 0 : i32
    %c0_i32_0 = arith.constant 0 : i32
    %c0_i32_1 = arith.constant 0 : i32
    %c0_i32_2 = arith.constant 0 : i32
    return %arg0, %c0_i32, %c0_i32_0, %c0_i32_1 : i32, i32, i32, i32
  }
  func.func @transform_1(%arg0: i32) -> (i32, i32, i32, i32) {
    %c0_i32 = arith.constant 0 : i32
    %c0_i32_0 = arith.constant 0 : i32
    %c0_i32_1 = arith.constant 0 : i32
    %c0_i32_2 = arith.constant 0 : i32
    %c0_i32_3 = arith.constant 0 : i32
    return %c0_i32, %c0_i32_0, %c0_i32_1, %c0_i32_2 : i32, i32, i32, i32
  }
  func.func @transform_2(%arg0: i32) -> (i32, i32) {
    %c0_i32 = arith.constant 0 : i32
    %c0_i32_0 = arith.constant 0 : i32
    %c0_i32_1 = arith.constant 0 : i32
    return %c0_i32, %c0_i32_0 : i32, i32
  }
  func.func @transform_3(%arg0: i32) -> (i32, i32, i32, i32) {
    %c0_i32 = arith.constant 0 : i32
    %c0_i32_0 = arith.constant 0 : i32
    %c0_i32_1 = arith.constant 0 : i32
    %c0_i32_2 = arith.constant 0 : i32
    return %arg0, %c0_i32, %c0_i32_0, %c0_i32_1 : i32, i32, i32, i32
  }
  func.func @transform_4(%arg0: i32) -> (i32, i32, i32, i32) {
    %c0_i32 = arith.constant 0 : i32
    %c0_i32_0 = arith.constant 0 : i32
    %c0_i32_1 = arith.constant 0 : i32
    %c0_i32_2 = arith.constant 0 : i32
    return %arg0, %c0_i32, %c0_i32_0, %c0_i32_1 : i32, i32, i32, i32
  }
}

</mosaic_0001>

<bundles_post_ra>
// kernel: tpu_custom_call.1
= control target key start
LH: loop header
LB: loop body
LE: loop exit
PB: predicated region body
PF: predicated region fallthrough
CT: control target
= control target key end

     0   :  { %s4009_s0 = inlined_call_operand.hbm [shape: bf16[2,4,16,16], index: 0, kind: input, shape index: {}]   ;;  %s4010_s1 = inlined_call_operand.hbm [shape: bf16[3,3,16,128], index: 1, kind: input, shape index: {}]   ;;  %s4011_s2 = inlined_call_operand.hbm [shape: bf16[16,128], index: 2, kind: input, shape index: {}]   ;;  %s4012_s3 = inlined_call_operand.hbm [shape: bf16[2,4,16,16], index: 3, kind: input, shape index: {}]   ;;  %s4013_s4 = inlined_call_operand.hbm [shape: bf16[2,4,16,128], index: 4, kind: output, shape index: {}]  }
   0x1   :  { %4022 = sst [smem:[#allocation17_spill]] %s4009_s0 }
   0x2   :  { %4023 = sst [smem:[#allocation18_spill]] %s4010_s1 }
   0x3   :  { %4024 = sst [smem:[#allocation19_spill]] %s4011_s2 }
   0x4   :  { %9 = vsyncpa [#allocation5], 0 }
   0x5   :  { %11 = vsyncpa [#allocation5 + $0x1], 0 }
   0x6   :  { %12 = vsyncpa [#allocation8], 0 }
   0x7   :  { %13 = vsyncpa [#allocation11], 0 }
   0x8   :  { %15 = vsyncpa [#allocation11 + $0x1], 0 }
   0x9   :  { %16 = vsyncpa [#allocation6], 0 }
   0xa   :  { %18 = vsyncpa [#allocation6 + $0x1], 0  ;;  %s3455_s15 = smov 0   ;;  %s3457_s16 = smov 0  }
   0xb   :  { %s3459_s17 = smov 0   ;;  %s3461_s18 = smov 0  }
   0xc LB: > { %s3476_s19 = sadd.s32 4294967295, %s3416_s18   ;;  %s2654_s20 = sadd.s32 4294967294, %s3416_s18   ;;  %s3416_s18 = sphi %s3461_s18, %s4052_s18   ;;  %s3412_s17 = sphi %s3459_s17, %s4051_s17   ;;  %s3408_s16 = sphi %s3457_s16, %s4050_s16   ;;  %s3404_s15 = sphi %s3455_s15, %s4049_s15  }
   0xd   : > { %p44_p0 = scmp.ne.s32.totalorder %s3408_s16, %s3404_s15  ;;  %p4019_p1 = scmp.eq.s32.totalorder %s3476_s19, 0 }
   0xe   : > { %p136_p2 = scmp.eq.s32.totalorder %s3476_s19, 1  ;;  %p142_p3 = scmp.eq.s32.totalorder %s2654_s20, 1 }
   0xf   : > { %p3485_p4 = por %p4019_p1, %p44_p0  ;;  %p2655_p5 = scmp.ge.s32.totalorder %s3416_s18, 1 }
  0x10   : > { %p3490_p6 = por %p142_p3, %p44_p0  ;;  %p149_p7 = scmp.lt.s32.totalorder %s3416_s18, 3 }
  0x11   : > { %s4025_s21 = scalar_select %p3485_p4, 1, 0 }
  0x12   : > { %s4026_s22 = scalar_select %p3490_p6, 1, 0 }
  0x13   : > { %p3495_p8 = pnand %p2655_p5, %p149_p7  ;;  %s3418_s24 = smov [#allocation7]  }
  0x14   : > { %s161_s25 = sshll.u32 %s3418_s24, 4  ;;  %s3419_s27 = smov [#allocation9]   ;;  %s162_s25 = int_to_ptr.vmem [resolvable:$true] %s161_s25 }
  0x15   : > { %p3100_p9 = pneg %p3495_p8  ;;  %s174_s28 = sshll.u32 %s3419_s27, 4  ;;  %s175_s28 = int_to_ptr.vmem [resolvable:$true] %s174_s28 }
  0x16   : > { %s3247_s29 = scalar_lea.vmem %s162_s25, 1152  ;;  %p3255_p5 = scmp.lt.s32.totalorder %s162_s25, %s162_s25 }
  0x17   : > { %p3504_p11 = pnand %p3100_p9, %p4019_p1  ;;  %p3248_p13 = scmp.ne.s32.totalorder %s162_s25, %s3247_s29 }
  0x18   : > { %p3256_p7 = scmp.lt.s32.totalorder %s3247_s29, %s3247_s29 }
  0x19   : > { %p3238_p12 = pneg %p3504_p11 }
  0x1a   : > { %p3257_p10 = por %p3256_p7, %p3255_p5 }
  0x1b   : > { %p3250_p0 = pnand %p3248_p13, %p3238_p12 }
  0x1d   : > { %p3251_p3 = pneg %p3250_p0 }
  0x1f   : > { %p3258_p9 = pnand %p3257_p10, %p3251_p3 }
  0x21   : > { %3261 = shalt.err (!%p3258_p9)
}
  0x22   : > { %s4015_s30 = smov 64   ;;  %s4017_s5 = smov 4  }
  0x23   : > { %s4029_s1 = sld [smem:[#allocation18_spill]]  ;;  %s3273_s8 = scalar_lea.vmem %s175_s28, 128 }
  0x24   : > { %p3274_p13 = scmp.ne.s32.totalorder %s175_s28, %s3273_s8  ;;  %p3281_p10 = scmp.lt.s32.totalorder %s175_s28, %s175_s28 }
  0x25   : > { %p3282_p3 = scmp.lt.s32.totalorder %s3273_s8, %s3273_s8 }
  0x26   : > { %p3276_p0 = pnand %p3274_p13, %p3238_p12 }
  0x27   : > { %p3283_p7 = por %p3282_p3, %p3281_p10 }
  0x28   : > { %p3277_p5 = pneg %p3276_p0 }
  0x29   : > { %3103 = dma.hbm_to_vmem [thread:$0]  (!%p3504_p11), %s4029_s1, 1152, %s162_s25, [#allocation8], %s4015_s30, %s4015_s30, %s4017_s5  }
  0x2a   : > { %p3284_p9 = pnand %p3283_p7, %p3277_p5 }
  0x2c   : > { %3287 = shalt.err (!%p3284_p9)
}
  0x2d   : > { %s4030_s2 = sld [smem:[#allocation19_spill]]  ;;  %s3533_s11 = sadd.s32 1, %s3416_s18  }
  0x2e   : > { %s31_s12 = sadd.s32 1, %s3412_s17  ;;  %s28_s13 = ssub.s32 %s3416_s18, %s3533_s11 }
  0x2f   : > { %p38_p12 = scmp.ne.s32.totalorder %s3412_s17, %s3408_s16  ;;  %p29_p13 = scmp.eq.s32.totalorder %s28_s13, 0 }
  0x30   : > { %p39_p0 = scmp.eq.s32.totalorder %s3416_s18, 0  ;;  %p3120_p10 = scmp.lt.s32.totalorder %s3416_s18, 2 }
  0x31   : > { %p3543_p5 = por %p136_p2, %p38_p12  ;;  %s3552_s24 = sand.u32 1, %s3412_s17  }
  0x32   : > { %s3549_s20 = scalar_select %p29_p13, %s3412_s17, %s31_s12  }
  0x33   : > { %3106 = dma.hbm_to_vmem [thread:$0]  (!%p3504_p11), %s4030_s2, 128, %s175_s28, [#allocation8], %s4015_s30, %s4015_s30, %s4017_s5  }
  0x34   : > { %s4031_s14 = scalar_select %p3543_p5, 1, 0 }
  0x35   : > { %p40_p3 = por %p39_p0, %p38_p12  ;;  %s4014_s25 = sshll.u32 %s3552_s24, 5 }
  0x36   : > { %s2831_s26 = sshll.u32 %s3416_s18, 9  ;;  %s4032_s0 = sld [smem:[#allocation17_spill]] }
  0x37   : > { %s192_s6 = scalar_lea.vmem [#allocation4], %s4014_s25  ;;  %p3565_p2 = pnand %p3120_p10, %p40_p3 }
  0x38   : > { %s199_s7 = sshll.u32 %s192_s6, 4  ;;  %s3572_s12 = scalar_lea.hbm %s4012_s3, %s2831_s26  ;;  %s3563_s7 = int_to_ptr.vmem [resolvable:$true] %s199_s7 }
  0x39   : > { %s189_s13 = scalar_lea.sflag [#allocation5], %s3552_s24  ;;  %p3290_p7 = pneg %p3565_p2 }
  0x3c   : > { %s3559_s29 = scalar_lea.hbm %s4032_s0, %s2831_s26  ;;  %s3293_s25 = scalar_lea.hbm %s4032_s0, 1024 }
  0x3d   : > { %s3288_s27 = scalar_lea.hbm %s3559_s29, 512  ;;  %p3294_p13 = scmp.lt.s32.totalorder %s3559_s29, %s4032_s0 }
  0x3e   : > { %p3289_p11 = scmp.ne.s32.totalorder %s3559_s29, %s3288_s27  ;;  %p3295_p0 = scmp.lt.s32.totalorder %s3293_s25, %s3288_s27 }
  0x40   : > { %p3291_p9 = pnand %p3290_p7, %p3289_p11  ;;  %p3296_p10 = por %p3295_p0, %p3294_p13 }
  0x42   : > { %p3292_p12 = pneg %p3291_p9 }
  0x44   : > { %p3297_p3 = pnand %p3296_p10, %p3292_p12 }
  0x46   : > { %3300 = shalt.err (!%p3297_p3)
}
  0x47   : > { %s3301_s26 = scalar_lea.vmem %s3563_s7, 512  ;;  %s3422_s9 = smov [#allocation4]  }
  0x48   : > { %p3302_p1 = scmp.ne.s32.totalorder %s3563_s7, %s3301_s26  ;;  %s3306_s10 = sshll.u32 %s3422_s9, 4  ;;  %s3307_s10 = int_to_ptr.vmem [resolvable:$false] %s3306_s10 }
  0x49   : > { %s3308_s28 = scalar_lea.vmem %s3307_s10, 1024  ;;  %p3309_p6 = scmp.lt.s32.totalorder %s3563_s7, %s3307_s10 }
  0x4a   : > { %p3304_p11 = pnand %p3302_p1, %p3290_p7  ;;  %p3310_p5 = scmp.lt.s32.totalorder %s3308_s28, %s3301_s26 }
  0x4c   : > { %p3305_p9 = pneg %p3304_p11  ;;  %p3311_p4 = por %p3310_p5, %p3309_p6 }
  0x4e   : > { %p3312_p13 = pnand %p3311_p4, %p3305_p9 }
  0x50   : > { %3315 = shalt.err (!%p3312_p13)
}
  0x51   : > { %s4034_s30 = smov 4   ;;  %s4035_s5 = smov 64  }
  0x52   : > { %3110 = dma.hbm_to_vmem [thread:$0]  (!%p3565_p2), %s3559_s29, 512, %s3563_s7, %s189_s13, %s4035_s5, %s4035_s5, %s4034_s30  }
  0x53   : > { %s4036_s25 = sshll.u32 %s3552_s24, 5  ;;  %s210_s26 = scalar_lea.sflag [#allocation11], %s3552_s24 }
  0x54   : > { %s213_s27 = scalar_lea.vmem [#allocation10], %s4036_s25  ;;  %s3316_s9 = scalar_lea.hbm %s3572_s12, 512 }
  0x55   : > { %s220_s6 = sshll.u32 %s213_s27, 4  ;;  %p3317_p1 = scmp.ne.s32.totalorder %s3572_s12, %s3316_s9  ;;  %s3606_s6 = int_to_ptr.vmem [resolvable:$true] %s220_s6 }
  0x56   : > { %s3321_s0 = scalar_lea.hbm %s4012_s3, 1024  ;;  %p3322_p5 = scmp.lt.s32.totalorder %s3572_s12, %s4012_s3 }
  0x57   : > { %p3319_p4 = pnand %p3317_p1, %p3290_p7  ;;  %p3323_p12 = scmp.lt.s32.totalorder %s3321_s0, %s3316_s9 }
  0x59   : > { %p3320_p6 = pneg %p3319_p4  ;;  %p3324_p0 = por %p3323_p12, %p3322_p5 }
  0x5b   : > { %p3325_p10 = pnand %p3324_p0, %p3320_p6 }
  0x5d   : > { %3328 = shalt.err (!%p3325_p10)
}
  0x5e   : > { %s3329_s24 = scalar_lea.vmem %s3606_s6, 512  ;;  %s3423_s29 = smov [#allocation10]  }
  0x5f   : > { %p3330_p3 = scmp.ne.s32.totalorder %s3606_s6, %s3329_s24  ;;  %s3334_s7 = sshll.u32 %s3423_s29, 4  ;;  %s3335_s7 = int_to_ptr.vmem [resolvable:$false] %s3334_s7 }
  0x60   : > { %s3336_s13 = scalar_lea.vmem %s3335_s7, 1024  ;;  %p3337_p13 = scmp.lt.s32.totalorder %s3606_s6, %s3335_s7 }
  0x61   : > { %p3332_p11 = pnand %p3330_p3, %p3290_p7  ;;  %p3338_p1 = scmp.lt.s32.totalorder %s3336_s13, %s3329_s24 }
  0x63   : > { %p3333_p9 = pneg %p3332_p11  ;;  %p3339_p4 = por %p3338_p1, %p3337_p13 }
  0x65   : > { %p3340_p5 = pnand %p3339_p4, %p3333_p9 }
  0x67   : > { %3343 = shalt.err (!%p3340_p5)
}
  0x68   : > { %3113 = dma.hbm_to_vmem [thread:$0]  (!%p3565_p2), %s3572_s12, 512, %s3606_s6, %s210_s26, %s4035_s5, %s4035_s5, %s4034_s30  }
  0x69   : > { %232 = sbr.rel (%p3495_p8) target bundleno = 475 (0x1db), region = 36  ;;  %s3637_s0 = sand.u32 (!%p3495_p8), 1, %s3408_s16  }
  0x6a   : > { %s3640_s1 = sshll.u32 (!%p3495_p8), %s3637_s0, 5  ;;  %s235_s2 = scalar_lea.sflag (!%p3495_p8), [#allocation5], %s3637_s0 }
  0x6b   : > { %s3644_s8 = scalar_lea.vmem (!%p3495_p8), [#allocation4], %s3640_s1  ;;  %p4037_p7 = scmp.ne.s32.totalorder (!%p3495_p8), %s4025_s21, 0 }
  0x6e   : > { %3387 = dma.done.wait (%p4037_p7), %s235_s2, 512  }
  0x6f   : > { %3389 = vsyncadd (%p4037_p7), %s235_s2, 4294966784  ;;  %p4038_p2 = scmp.eq.s32.totalorder %s3476_s19, 0 }
  0x71   : > { %3391 = dma.done.wait (%p4038_p2), [#allocation8], 1280   ;;  %p4039_p8 = pmov %p4038_p2 }
  0x72   : > { %s252_s23 = scalar_lea.sflag [#allocation11], %s3637_s0  ;;  %s3656_s12 = scalar_lea.vmem [#allocation10], %s3640_s1 }
  0x73   : > { %3393 = vsyncadd (%p4039_p8), [#allocation8], 4294966016 }
  0x74   : > { %3395 = dma.done.wait (%p4037_p7), %s252_s23, 512  }
  0x75   : > { %3397 = vsyncadd (%p4037_p7), %s252_s23, 4294966784  ;;  %vm286_vm0 = vcmask 125952   ;;  %v3424_v0 = vmov 0   ;;  %vm290_vm1 = vcmask 122880   ;;  %vm291_vm2 = vsmask.f32 256 }
  0x76   : > { %287 = vst.msk [vmem:[#allocation2] sm:$0xf] %vm286_vm0, %v3424_v0  ;;  %288 = vst.msk [vmem:[#allocation2 + $0x4] sm:$0xf] %vm286_vm0, %v3424_v0  ;;  %vm297_vm4 = vsmask.f32 7938 }
  0x77   : > { %289 = vst.msk [vmem:[#allocation2 + $0x8] sm:$0xf] %vm286_vm0, %v3424_v0  ;;  %320 = vst.msk [vmem:[#allocation2 + $0x3c] sm:$0xf] %vm286_vm0, %v3424_v0  ;;  %v3165_v2 = vld [vmem:[#allocation7] sm:$0xff]   ;;  %vm491_vm5 = vcmask 130048  }
  0x78   : > { %321 = vst.msk [vmem:[#allocation2 + $0x40] sm:$0xf] %vm286_vm0, %v3424_v0  ;;  %322 = vst.msk [vmem:[#allocation2 + $0x44] sm:$0xf] %vm286_vm0, %v3424_v0  ;;  %2936 = vmatprep.subr.bf16.mxu0 %v3165_v2  ;;  %v3673_v4 = vld [vmem:[#allocation7 + $0x10] sm:$0xff]   ;;  %v3169_v11 = vld [vmem:[#allocation7 + $0x8] sm:$0xff]  }
  0x79   : > { %vm3669_vm3 = vmand %vm290_vm1, %vm291_vm2  ;;  %2937 = vmatpush3.bf16.msra.mxu0 %v3165_v2  ;;  %v293_v5 = vld [vmem:[#allocation2 + $0xc] sm:$0x1]  ;;  %v323_v6 = vld [vmem:[%s3644_s8] sm:$0xf]  ;;  %2950 = vmatprep.subr.bf16.mxu1 %v3169_v11  ;;  %vm325_vm7 = vsmask.f32 4368 }
  0x7a   : > { %2964 = vmatprep.subr.bf16.mxu0 %v3673_v4  ;;  %v294_v7 = vsel %vm3669_vm3, 0, %v293_v5  ;;  %vm3681_vm6 = vmand %vm286_vm0, %vm297_vm4  ;;  %v328_v9 = vshrl.u32 %v323_v6, 16  ;;  %v331_v10 = vshll.u32 %v323_v6, 16  ;;  %v299_v13 = vld [vmem:[#allocation2 + $0x14] sm:$0xf]  ;;  %2951 = vmatpush3.bf16.msra.mxu1 %v3169_v11  ;;  %v3688_v16 = vld [vmem:[#allocation7 + $0x18] sm:$0xff]  }
  0x7b   : > { %295 = vst [vmem:[#allocation2 + $0xc] sm:$0x1] %v294_v7  ;;  %v300_v14 = vsel %vm3681_vm6, 0, %v299_v13  ;;  %v324_v15 = vld [vmem:[%s3644_s8 + $0x4] sm:$0xf]  ;;  %2978 = vmatprep.subr.bf16.mxu1 %v3688_v16  ;;  %vm3699_vm8 = vmor %vm291_vm2, %vm325_vm7  ;;  %vm876_vm10 = vcmask 1046528  }
  0x7c   : > { %v330_v12 = vrot.slane %v328_v9, 7  ;;  %301 = vst [vmem:[#allocation2 + $0x14] sm:$0xf] %v300_v14  ;;  %v336_v18 = vshrl.u32 %v324_v15, 16  ;;  %v339_v19 = vshll.u32 %v324_v15, 16  ;;  %v3725_v7 = vld [vmem:[#allocation7 + $0x20] sm:$0xff]  }
  0x7d   : > { %v3166_v3 = vld [vmem:[#allocation2] sm:$0xff]   ;;  %v302_v20 = vld [vmem:[#allocation2 + $0x18] sm:$0x1]  ;;  %v2671_v21 = vld [vmem:[%s3644_s8 + $0x8] sm:$0xf]  ;;  %vm3426_vm11 = vmmov 0  }
  0x7e   : > { %2938 = vmatprep.mubr.msk.bf16.mxu0 %vm491_vm5, %v3166_v3  ;;  %v333_v17 = vor.u32 %v331_v10, %v330_v12  ;;  %v3692_v22 = vld [vmem:[#allocation2] sm:$0xff]   ;;  %v334_v23 = vrot.slane %v330_v12, 4  ;;  %v303_v24 = vsel %vm3669_vm3, 0, %v302_v20  ;;  %v2672_v25 = vld [vmem:[%s3644_s8 + $0xc] sm:$0xf]  ;;  %v358_v26 = vshrl.u32 %v2671_v21, 16 }
  0x7f   : > { %v338_v27 = vrot.slane %v336_v18, 7  ;;  %304 = vst [vmem:[#allocation2 + $0x18] sm:$0x1] %v303_v24  ;;  %v361_v28 = vshll.u32 %v2671_v21, 16  ;;  %v366_v29 = vshrl.u32 %v2672_v25, 16  ;;  %v369_v30 = vshll.u32 %v2672_v25, 16 }
  0x80   : > { %v305_v31 = vld [vmem:[#allocation2 + $0x20] sm:$0xf]  ;;  %v360_v34 = vrot.slane %v358_v26, 7  ;;  %v308_v36 = vld [vmem:[#allocation2 + $0x24] sm:$0x1]  ;;  %v650_v43 = vshll.u32 %v3692_v22, 16 }
  0x81   : > { %v306_v35 = vsel %vm3681_vm6, 0, %v305_v31  ;;  %v341_v38 = vor.u32 %v339_v19, %v338_v27  ;;  %v343_v39 = vrot.slane %v338_v27, 4  ;;  %v368_v40 = vrot.slane %v366_v29, 7  ;;  %v2673_v41 = vld [vmem:[%s3644_s8 + $0x10] sm:$0xf]  ;;  %s3937_s21 = scalar_lea.vmem [#allocation12], %s3640_s1 }
  0x82   : > { %v347_v32 = vld [vmem:[#allocation2 + $0xc] sm:$0xf]  ;;  %307 = vst [vmem:[#allocation2 + $0x20] sm:$0xf] %v306_v35  ;;  %v2674_v42 = vld [vmem:[%s3644_s8 + $0x14] sm:$0xf]  ;;  %v363_v50 = vor.u32 %v361_v28, %v360_v34 }
  0x83   : > { %v348_v37 = vsel %vm3681_vm6, %v333_v17, %v347_v32  ;;  %v364_v44 = vrot.slane %v360_v34, 4  ;;  %v309_v45 = vsel %vm3669_vm3, 0, %v308_v36  ;;  %v388_v46 = vshrl.u32 %v2673_v41, 16  ;;  %v311_v47 = vld [vmem:[#allocation2 + $0x2c] sm:$0xf]  ;;  %s2539_s30 = sshll.u32 %s3937_s21, 4  ;;  %s3959_s30 = int_to_ptr.vmem [resolvable:$true] %s2539_s30 }
  0x84   : > { %349 = vst [vmem:[#allocation2 + $0xc] sm:$0xf] %v348_v37  ;;  %v342_v48 = vsel %vm3699_vm8, %v334_v23, %v341_v38  ;;  %v351_v49 = vld [vmem:[#allocation2 + $0x14] sm:$0x1]  ;;  %v371_v51 = vor.u32 %v369_v30, %v368_v40  ;;  %310 = vst [vmem:[#allocation2 + $0x24] sm:$0x1] %v309_v45 }
  0x85   : > { %v391_v52 = vshll.u32 %v2673_v41, 16  ;;  %350 = vst.msk [vmem:[#allocation2 + $0x10] sm:$0xf] %vm286_vm0, %v342_v48  ;;  %v352_v53 = vsel %vm3669_vm3, %v343_v39, %v351_v49  ;;  %v390_v54 = vrot.slane %v388_v46, 7  ;;  %v396_v55 = vshrl.u32 %v2674_v42, 16  ;;  %s2841_s5 = sshll.u32 %s3476_s19, 9 }
  0x86   : > { %v399_v56 = vshll.u32 %v2674_v42, 16  ;;  %vm646_vm9 = vsmask.f32 7424  ;;  %353 = vst [vmem:[#allocation2 + $0x14] sm:$0x1] %v352_v53  ;;  %v372_v57 = vsel %vm3699_vm8, %v364_v44, %v371_v51  ;;  %v373_v58 = vrot.slane %v368_v40, 4  ;;  %s3964_s6 = scalar_lea.hbm %s4013_s4, %s2841_s5 }
  0x87   : > { %v312_v59 = vsel %vm3681_vm6, 0, %v311_v47  ;;  %v377_v60 = vld [vmem:[#allocation2 + $0x18] sm:$0xf]  ;;  %380 = vst.msk [vmem:[#allocation2 + $0x1c] sm:$0xf] %vm286_vm0, %v372_v57  ;;  %v394_v61 = vrot.slane %v390_v54, 4  ;;  %v393_v2 = vor.u32 %v391_v52, %v390_v54 }
  0x88   : > { %v398_v62 = vrot.slane %v396_v55, 7  ;;  %313 = vst [vmem:[#allocation2 + $0x2c] sm:$0xf] %v312_v59  ;;  %v648_v63 = vshrl.u32 %v3692_v22, 16  ;;  %v378_v0 = vsel %vm3681_vm6, %v363_v50, %v377_v60  ;;  %v652_v3 = vrot.slane %v650_v43, 1  ;;  %s2526_s19 = scalar_lea.sflag [#allocation6], %s3637_s0 }
  0x89   : > { %379 = vst [vmem:[#allocation2 + $0x18] sm:$0xf] %v378_v0  ;;  %v381_v5 = vld [vmem:[#allocation2 + $0x20] sm:$0x1]  ;;  %v3181_v28 = vld [vmem:[#allocation2] sm:$0xfe]  }
  0x8a   : > { %v401_v6 = vor.u32 %v399_v56, %v398_v62  ;;  %v382_v10 = vsel %vm3669_vm3, %v373_v58, %v381_v5  ;;  %v403_v15 = vrot.slane %v398_v62, 4  ;;  %v653_v17 = vor.u32 %v652_v3, %v648_v63  ;;  %v314_v60 = vld [vmem:[#allocation2 + $0x30] sm:$0x1]  ;;  %s3344_s26 = scalar_lea.vmem %s3959_s30, 512  ;;  %p4046_p12 = scmp.ne.s32.totalorder %s4031_s14, 0 }
  0x8b   : > { %v3168_v9 = vld [vmem:[#allocation2 + $0x8] sm:$0xff]   ;;  %383 = vst [vmem:[#allocation2 + $0x20] sm:$0x1] %v382_v10  ;;  %v407_v12 = vld [vmem:[#allocation2 + $0x24] sm:$0xf]  ;;  %v877_v42 = vrot.slane %v3181_v28, 1  ;;  %p3345_p6 = scmp.ne.s32.totalorder %s3959_s30, %s3344_s26 }
  0x8c   : > { %v3171_v11 = vld [vmem:[#allocation2 + $0x8] sm:$0xff]   ;;  %v402_v13 = vsel %vm3699_vm8, %v394_v61, %v401_v6  ;;  %2939 = vmatmul.mubr.msk.bf16.vlgmr.msra.gmra.mxu0 %vm491_vm5, %v3168_v9  ;;  %v408_v14 = vsel %vm3681_vm6, %v393_v2, %v407_v12  ;;  %v2675_v61 = vld [vmem:[%s3644_s8 + $0x18] sm:$0xf]  ;;  %v315_v0 = vsel %vm3669_vm3, 0, %v314_v60  ;;  %v2676_v6 = vld [vmem:[%s3644_s8 + $0x1c] sm:$0xf] }
  0x8d   : > { %410 = vst.msk [vmem:[#allocation2 + $0x28] sm:$0xf] %vm286_vm0, %v402_v13  ;;  %2965 = vmatpush3.bf16.msra.mxu0 %v3673_v4  ;;  %v655_v18 = vshll.u32 %v3171_v11, 16  ;;  %v659_v19 = vshrl.u32 %v3171_v11, 16  ;;  %v3172_v20 = vld [vmem:[#allocation2 + $0x10] sm:$0xff]   ;;  %v3182_v34 = vld [vmem:[#allocation2 + $0x8] sm:$0xff]   ;;  %p3346_p0 = pnand %p3345_p6, %p4046_p12 }
  0x8e   : > { %v3173_v21 = vld [vmem:[#allocation2 + $0x10] sm:$0xff]   ;;  %409 = vst [vmem:[#allocation2 + $0x24] sm:$0xf] %v408_v14  ;;  %2992 = vmatprep.subr.bf16.mxu0 %v3725_v7  ;;  %2942 = vmatprep.mubr.msk.bf16.mxu0 %vm491_vm5, %v3172_v20  ;;  %v878_v43 = vrot.slane %v3182_v34, 1  ;;  %v418_v2 = vshrl.u32 %v2675_v61, 16  ;;  %v421_v3 = vshll.u32 %v2675_v61, 16 }
  0x8f   : > { %v657_v22 = vrot.slane %v655_v18, 1  ;;  %v663_v23 = vshll.u32 %v3173_v21, 16  ;;  %v667_v24 = vshrl.u32 %v3173_v21, 16  ;;  %v411_v25 = vld [vmem:[#allocation2 + $0x2c] sm:$0x1]  ;;  %v3740_v4 = vld [vmem:[#allocation7 + $0x28] sm:$0xff]   ;;  %p3347_p10 = pneg %p3346_p0 }
  0x90   : > { %v3175_v26 = vld [vmem:[#allocation2 + $0x18] sm:$0xff]   ;;  %v412_v27 = vsel %vm3669_vm3, %v403_v15, %v411_v25  ;;  %v879_v52 = vsel %vm876_vm10, %v877_v42, %v878_v43  ;;  %v3185_v62 = vld [vmem:[#allocation2 + $0xc] sm:$0xff]   ;;  %316 = vst [vmem:[#allocation2 + $0x30] sm:$0x1] %v315_v0  ;;  %v420_v12 = vrot.slane %v418_v2, 7  ;;  %v426_v13 = vshrl.u32 %v2676_v6, 16 }
  0x91   : > { %v658_v29 = vsel %vm646_vm9, %v653_v17, %v657_v22  ;;  %v661_v30 = vor.u32 %v659_v19, %v657_v22  ;;  %v665_v31 = vrot.slane %v663_v23, 1  ;;  %v3176_v32 = vld [vmem:[#allocation2 + $0x18] sm:$0xff]   ;;  %413 = vst [vmem:[#allocation2 + $0x2c] sm:$0x1] %v412_v27  ;;  %v429_v14 = vshll.u32 %v2676_v6, 16  ;;  %v3195_v17 = vld [vmem:[#allocation2 + $0xc] sm:$0xff]  }
  0x92   : > { %2952 = vmatprep.mubr.msk.bf16.mxu1 %vm491_vm5, %v658_v29  ;;  %v671_v37 = vshll.u32 %v3176_v32, 16  ;;  %v675_v38 = vshrl.u32 %v3176_v32, 16  ;;  %v3186_v53 = vld [vmem:[#allocation2 + $0x18] sm:$0xff]   ;;  %v424_v19 = vrot.slane %v420_v12, 4  ;;  %v428_v20 = vrot.slane %v426_v13, 7  ;;  %s3427_s9 = smov [#allocation12]  }
  0x93   : > { %v666_v35 = vsel %vm646_vm9, %v661_v30, %v665_v31  ;;  %v669_v36 = vor.u32 %v667_v24, %v665_v31  ;;  %v882_v63 = vrot.slane %v3186_v53, 1  ;;  %v3763_v9 = vld [vmem:[#allocation7 + $0x30] sm:$0xff]   ;;  %v423_v21 = vor.u32 %v421_v3, %v420_v12  ;;  %v3210_v3 = vld [vmem:[#allocation7 + $0x40] sm:$0xff]   ;;  %s3348_s10 = sshll.u32 %s3427_s9, 4  ;;  %s3349_s10 = int_to_ptr.vmem [resolvable:$false] %s3348_s10 }
  0x94   : > { %2953 = vmatmul.mubr.msk.bf16.vlgmr.msra.gmra.mxu1 %vm491_vm5, %v666_v35  ;;  %2943 = vmatmul.mubr.msk.bf16.gmra.mxu0 %vm491_vm5, %v3175_v26  ;;  %v673_v40 = vrot.slane %v671_v37, 1  ;;  %v3179_v47 = vld [vmem:[#allocation2 + $0x28] ss:$0 sps:$4 sm:$0xff]   ;;  %v431_v23 = vor.u32 %v429_v14, %v428_v20  ;;  %v3196_v24 = vld [vmem:[#allocation2 + $0x14] sm:$0xff]   ;;  %v1252_v25 = vshll.u32 %v3195_v17, 16  ;;  %v3190_v32 = vld [vmem:[#allocation2 + $0x1c] sm:$0xff]   ;;  %p3351_p3 = scmp.lt.s32.totalorder %s3959_s30, %s3349_s10 }
  0x95   : > { %v3177_v39 = vld [vmem:[#allocation2 + $0x20] sm:$0xff]   ;;  %2979 = vmatpush3.bf16.msra.mxu1 %v3688_v16  ;;  %v3184_v16 = vld [vmem:[#allocation2 + $0x10] sm:$0xff]   ;;  %v1257_v34 = vshll.u32 %v3196_v24, 16  ;;  %v1250_v35 = vshrl.u32 %v3195_v17, 16  ;;  %s3350_s28 = scalar_lea.vmem %s3349_s10, 1024 }
  0x96   : > { %v3178_v41 = vld [vmem:[#allocation2 + $0x20] sm:$0xff]   ;;  %2946 = vmatprep.mubr.msk.bf16.mxu0 %vm491_vm5, %v3177_v39  ;;  %3006 = vmatprep.subr.bf16.mxu1 %v3740_v4  ;;  %v674_v44 = vsel %vm646_vm9, %v669_v36, %v673_v40  ;;  %v677_v45 = vor.u32 %v675_v38, %v673_v40  ;;  %v880_v58 = vrot.slane %v3184_v16, 1  ;;  %v432_v28 = vsel %vm3699_vm8, %v424_v19, %v431_v23  ;;  %v3187_v29 = vld [vmem:[#allocation2 + $0x14] sm:$0xff]   ;;  %p3352_p11 = scmp.lt.s32.totalorder %s3350_s28, %s3344_s26 }
  0x97   : > { %v679_v46 = vshll.u32 %v3178_v41, 16  ;;  %v683_v48 = vshrl.u32 %v3178_v41, 16  ;;  %2956 = vmatprep.mubr.msk.bf16.mxu1 %vm491_vm5, %v674_v44  ;;  %v3189_v11 = vld [vmem:[#allocation2 + $0x20] sm:$0xff]   ;;  %v437_v27 = vld [vmem:[#allocation2 + $0x30] sm:$0xf]  ;;  %v1254_v36 = vrot.slane %v1252_v25, 1 }
  0x98   : > { %v3180_v49 = vld [vmem:[#allocation2 + $0x28] sm:$0x1f]   ;;  %v881_v10 = vsel %vm876_vm10, %v878_v43, %v880_v58  ;;  %v883_v18 = vsel %vm876_vm10, %v880_v58, %v882_v63  ;;  %v884_v22 = vrot.slane %v3189_v11, 1  ;;  %v438_v30 = vsel %vm3681_vm6, %v423_v21, %v437_v27  ;;  %440 = vst.msk [vmem:[#allocation2 + $0x34] sm:$0xf] %vm286_vm0, %v432_v28  ;;  %v3198_v33 = vld [vmem:[#allocation2 + $0x1c] sm:$0xff]   ;;  %p3353_p9 = por %p3352_p11, %p3351_p3 }
  0x99   : > { %v681_v50 = vrot.slane %v679_v46, 1  ;;  %v687_v51 = vshll.u32 %v3180_v49, 16  ;;  %v691_v57 = vshrl.u32 %v3180_v49, 16  ;;  %v3191_v15 = vld [vmem:[#allocation2 + $0x28] sm:$0x1f]   ;;  %v1259_v39 = vrot.slane %v1257_v34, 1 }
  0x9a   : > { %v886_v26 = vrot.slane %v3191_v15, 1  ;;  %v885_v31 = vsel %vm876_vm10, %v882_v63, %v884_v22  ;;  %439 = vst [vmem:[#allocation2 + $0x30] sm:$0xf] %v438_v30  ;;  %v317_v38 = vld [vmem:[#allocation2 + $0x38] sm:$0xf]  ;;  %v3192_v41 = vld [vmem:[#allocation2 + $0x24] sm:$0xff]   ;;  %v1255_v42 = vor.u32 %v1254_v36, %v1250_v35  ;;  %p3354_p13 = pnand %p3353_p9, %p3347_p10 }
  0x9b   : > { %v682_v54 = vsel %vm646_vm9, %v677_v45, %v681_v50  ;;  %v685_v55 = vor.u32 %v683_v48, %v681_v50  ;;  %v689_v56 = vrot.slane %v687_v51, 1  ;;  %v318_v40 = vsel %vm3681_vm6, 0, %v317_v38  ;;  %v3201_v44 = vld [vmem:[#allocation2 + $0x24] sm:$0xff]   ;;  %v3199_v45 = vld [vmem:[#allocation2 + $0xc] sm:$0xfe]  }
  0x9c   : > { %2957 = vmatmul.mubr.msk.bf16.gmra.mxu1 %vm491_vm5, %v682_v54  ;;  %2947 = vmatmul.mubr.msk.bf16.gmra.mxu0 %vm491_vm5, %v3179_v47  ;;  %v887_v37 = vsel %vm876_vm10, %v884_v22, %v886_v26  ;;  %319 = vst [vmem:[#allocation2 + $0x38] sm:$0xf] %v318_v40  ;;  %v1261_v43 = vshrl.u32 %v3196_v24, 16  ;;  %v433_v47 = vrot.slane %v428_v20, 4  ;;  %v1265_v48 = vshll.u32 %v3198_v33, 16  ;;  %v3205_v60 = vld [vmem:[#allocation2 + $0x24] sm:$0xff]  }
  0x9d   : > { %2966 = vmatprep.mubr.msk.bf16.mxu0 %vm491_vm5, %v879_v52  ;;  %v690_v59 = vsel %vm646_vm9, %v685_v55, %v689_v56  ;;  %v693_v5 = vor.u32 %v691_v57, %v689_v56  ;;  %v1260_v49 = vsel %vm646_vm9, %v1255_v42, %v1259_v39  ;;  %v1269_v50 = vshrl.u32 %v3198_v33, 16  ;;  %v3202_v56 = vld [vmem:[#allocation2 + $0x1c] sm:$0xff]  }
  0x9e   : > { %2960 = vmatprep.mubr.msk.bf16.mxu1 %vm491_vm5, %v690_v59  ;;  %v1273_v16 = vshll.u32 %v3201_v44, 16  ;;  %v1263_v8 = vor.u32 %v1261_v43, %v1259_v39  ;;  %v1267_v51 = vrot.slane %v1265_v48, 1  ;;  %v1478_v52 = vrot.slane %v3199_v45, 1  ;;  %v3212_v22 = vld [vmem:[#allocation2 + $0x18] sm:$0xff]   ;;  %v3211_v40 = vld [vmem:[#allocation2 + $0x20] sm:$0xff]  }
  0x9f   : > { %v3194_v61 = vld [vmem:[#allocation2 + $0x34] ss:$0 sps:$4 sm:$0xff]   ;;  %v1277_v63 = vshrl.u32 %v3201_v44, 16  ;;  %v1481_v1 = vrot.slane %v3202_v56, 1  ;;  %v1483_v12 = vrot.slane %v3205_v60, 1  ;;  %v1853_v28 = vshll.u32 %v3212_v22, 16 }
  0xa0   : > { %v1271_v58 = vor.u32 %v1269_v50, %v1267_v51  ;;  %v1275_v59 = vrot.slane %v1273_v16, 1  ;;  %v3214_v44 = vld [vmem:[#allocation2 + $0x28] sm:$0xff]   ;;  %v3222_v16 = vld [vmem:[#allocation2 + $0x40] sm:$0x1f]  }
  0xa1   : > { %v3193_v46 = vld [vmem:[#allocation2 + $0x2c] sm:$0xff]   ;;  %v1484_v20 = vsel %vm876_vm10, %v1481_v1, %v1483_v12  ;;  %v1855_v36 = vrot.slane %v1853_v28, 1  ;;  %v3224_v60 = vld [vmem:[#allocation2 + $0x20] sm:$0xff]  }
  0xa2   : > { %v3204_v53 = vld [vmem:[#allocation2 + $0x2c] sm:$0xff]   ;;  %v3232_v28 = vld [vmem:[%s3656_s12 + $0x8] sm:$0xff]  }
  0xa3   : > { %v441_v54 = vld [vmem:[#allocation2 + $0x38] sm:$0x1]  ;;  %v1281_v0 = vshll.u32 %v3204_v53, 16  ;;  %v1285_v6 = vshrl.u32 %v3204_v53, 16  ;;  %v3207_v19 = vld [vmem:[#allocation2 + $0x2c] sm:$0xff]  }
  0xa4   : > { %2961 = vmatmul.mubr.msk.bf16.gmra.mxu1 %vm491_vm5, %v693_v5  ;;  %2967 = vmatmul.mubr.msk.bf16.vlgmr.msra.gmra.mxu0 %vm491_vm5, %v881_v10  ;;  %v442_v57 = vsel %vm3669_vm3, %v433_v47, %v441_v54  ;;  %v1276_v5 = vsel %vm646_vm9, %v1271_v58, %v1275_v59  ;;  %v1279_v10 = vor.u32 %v1277_v63, %v1275_v59  ;;  %v1485_v25 = vrot.slane %v3207_v19, 1  ;;  %v3218_v39 = vld [vmem:[#allocation2 + $0x30] sm:$0xff]   ;;  %v3223_v59 = vld [vmem:[#allocation2 + $0x18] sm:$0xfe]  }
  0xa5   : > { %2993 = vmatpush3.bf16.msra.mxu0 %v3725_v7  ;;  %2980 = vmatprep.mubr.msk.bf16.mxu1 %vm491_vm5, %v3185_v62  ;;  %v3778_v7 = vld [vmem:[#allocation7 + $0x38] sm:$0xff]   ;;  %443 = vst [vmem:[#allocation2 + $0x38] sm:$0x1] %v442_v57  ;;  %v1268_v62 = vsel %vm646_vm9, %v1263_v8, %v1267_v51  ;;  %v1283_v11 = vrot.slane %v1281_v0, 1  ;;  %v3216_v8 = vld [vmem:[#allocation2 + $0x30] sm:$0xff]   ;;  %v1878_v54 = vshrl.u32 %v3218_v39, 16 }
  0xa6   : > { %2970 = vmatprep.mubr.msk.bf16.mxu0 %vm491_vm5, %v883_v18  ;;  %3020 = vmatprep.subr.bf16.mxu0 %v3763_v9  ;;  %v1486_v34 = vsel %vm876_vm10, %v1483_v12, %v1485_v25  ;;  %v3217_v53 = vld [vmem:[#allocation9] sm:$0xff]   ;;  %v1890_v58 = vshll.u32 %v3222_v16, 16 }
  0xa7   : > { %v1287_v14 = vor.u32 %v1285_v6, %v1283_v11  ;;  %v1284_v18 = vsel %vm646_vm9, %v1279_v10, %v1283_v11  ;;  %v3225_v6 = vld [vmem:[#allocation2 + $0x28] sm:$0xff]   ;;  %v3227_v12 = vld [vmem:[#allocation2 + $0x30] sm:$0xff]  }
  0xa8   : > { %v1892_v0 = vrot.slane %v1890_v58, 1  ;;  %v3226_v19 = vld [vmem:[#allocation9] sm:$0xff]  }
  0xac   : > { %2981 = vmatmul.mubr.msk.bf16.vlgmr.msra.gmra.mxu1 %vm491_vm5, %v3187_v29  ;;  %2971 = vmatmul.mubr.msk.bf16.gmra.mxu0 %vm491_vm5, %v885_v31  ;;  %v3206_v13 = vld [vmem:[#allocation2 + $0x34] sm:$0x1f]   ;;  %v3425_v29 = vmov 0.0  }
  0xad   : > { %3007 = vmatpush3.bf16.msra.mxu1 %v3740_v4  ;;  %2984 = vmatprep.mubr.msk.bf16.mxu1 %vm491_vm5, %v3190_v32  ;;  %v3200_v4 = vld [vmem:[#allocation2 + $0x14] sm:$0xff]   ;;  %v1289_v15 = vshll.u32 %v3206_v13, 16  ;;  %v1293_v24 = vshrl.u32 %v3206_v13, 16  ;;  %v1851_v32 = vshrl.u32 %v3212_v22, 16  ;;  %v1894_v13 = vshrl.u32 %v3222_v16, 16 }
  0xae   : > { %2974 = vmatprep.mubr.msk.bf16.mxu0 %vm491_vm5, %v887_v37  ;;  %3034 = vmatprep.subr.bf16.mxu1 %v3778_v7  ;;  %v1479_v55 = vrot.slane %v3200_v4, 1  ;;  %v3209_v31 = vld [vmem:[#allocation2 + $0x18] sm:$0xff]   ;;  %v3215_v37 = vld [vmem:[#allocation2 + $0x28] sm:$0xff]  }
  0xaf   : > { %v1291_v21 = vrot.slane %v1289_v15, 1  ;;  %v1856_v33 = vor.u32 %v1855_v36, %v1851_v32  ;;  %v1870_v45 = vshrl.u32 %v3215_v37, 16  ;;  %v3220_v48 = vld [vmem:[#allocation2 + $0x38] sm:$0xff]   ;;  %v2084_v15 = vrot.slane %v3227_v12, 1  ;;  %v3235_v32 = vld [vmem:[%s3656_s12 + $0x18] sm:$0xff]  }
  0xb0   : > { %v1480_v2 = vsel %vm876_vm10, %v1478_v52, %v1479_v55  ;;  %v1482_v17 = vsel %vm876_vm10, %v1479_v55, %v1481_v1  ;;  %v1882_v51 = vshll.u32 %v3220_v48, 16  ;;  %v3219_v56 = vld [vmem:[#allocation2 + $0x38] sm:$0xff]   ;;  %v1886_v57 = vshrl.u32 %v3220_v48, 16 }
  0xb1   : > { %v1292_v23 = vsel %vm646_vm9, %v1287_v14, %v1291_v21  ;;  %v1295_v30 = vor.u32 %v1293_v24, %v1291_v21  ;;  %v2082_v14 = vrot.slane %v3225_v6, 1  ;;  %v3228_v24 = vld [vmem:[%s3656_s12] sm:$0xff]  }
  0xb3   : > { %v2085_v21 = vsel %vm876_vm10, %v2082_v14, %v2084_v15 }
  0xb4   : > { %2985 = vmatmul.mubr.msk.bf16.gmra.mxu1 %vm491_vm5, %v3192_v41  ;;  %2975 = vmatmul.mubr.msk.bf16.gmra.mxu0 %vm491_vm5, %v886_v26  ;;  %v3213_v26 = vld [vmem:[#allocation2 + $0x20] sm:$0xff]   ;;  %v1866_v41 = vshll.u32 %v3215_v37, 16 }
  0xb5   : > { %2988 = vmatprep.mubr.msk.bf16.mxu1 %vm491_vm5, %v3193_v46  ;;  %2994 = vmatprep.mubr.msk.bf16.mxu0 %vm491_vm5, %v1260_v49  ;;  %v1862_v42 = vshrl.u32 %v3213_v26, 16  ;;  %v1874_v46 = vshll.u32 %v3218_v39, 16 }
  0xb6   : > { %v1868_v47 = vrot.slane %v1866_v41, 1 }
  0xb7   : > { %v1876_v50 = vrot.slane %v1874_v46, 1 }
  0xb8   : > { %v1872_v49 = vor.u32 %v1870_v45, %v1868_v47 }
  0xba   : > { %v1877_v55 = vsel %vm646_vm9, %v1872_v49, %v1876_v50 }
  0xbc   : > { %2989 = vmatmul.mubr.msk.bf16.gmra.mxu1 %vm491_vm5, %v3194_v61  ;;  %2995 = vmatmul.mubr.msk.bf16.vlgmr.msra.gmra.mxu0 %vm491_vm5, %v1268_v62  ;;  %v1884_v61 = vrot.slane %v1882_v51, 1  ;;  %v1880_v62 = vor.u32 %v1878_v54, %v1876_v50 }
  0xbd   : > { %3021 = vmatpush3.bf16.msra.mxu0 %v3763_v9  ;;  %3008 = vmatprep.mubr.msk.bf16.mxu1 %vm491_vm5, %v1480_v2  ;;  %v3208_v9 = vld [vmem:[#allocation2 + $0x34] sm:$0x1f]   ;;  %v2079_v2 = vrot.slane %v3223_v59, 1 }
  0xbe   : > { %2998 = vmatprep.mubr.msk.bf16.mxu0 %vm491_vm5, %v1276_v5  ;;  %3048 = vmatprep.subr.bf16.mxu0 %v3210_v3  ;;  %v1487_v27 = vrot.slane %v3208_v9, 1  ;;  %v1888_v63 = vor.u32 %v1886_v57, %v1884_v61  ;;  %v3221_v5 = vld [vmem:[#allocation2 + $0x40] ss:$0 sps:$4 sm:$0xff]   ;;  %v1885_v1 = vsel %vm646_vm9, %v1880_v62, %v1884_v61 }
  0xbf   : > { %v3231_v9 = vld [vmem:[#allocation2 + $0x40] sm:$0x1f]  }
  0xc0   : > { %v1488_v35 = vsel %vm876_vm10, %v1485_v25, %v1487_v27  ;;  %v1893_v10 = vsel %vm646_vm9, %v1888_v63, %v1892_v0 }
  0xc4   : > { %3009 = vmatmul.mubr.msk.bf16.vlgmr.msra.gmra.mxu1 %vm491_vm5, %v1482_v17  ;;  %2999 = vmatmul.mubr.msk.bf16.gmra.mxu0 %vm491_vm5, %v1284_v18  ;;  %v1896_v17 = vor.u32 %v1894_v13, %v1892_v0 }
  0xc5   : > { %3035 = vmatpush3.bf16.msra.mxu1 %v3778_v7  ;;  %3012 = vmatprep.mubr.msk.bf16.mxu1 %vm491_vm5, %v1484_v20  ;;  %v1858_v7 = vshll.u32 %v3213_v26, 16  ;;  %v3229_v20 = vld [vmem:[#allocation2 + $0x38] sm:$0xff]   ;;  %v3230_v26 = vld [vmem:[#allocation9] sm:$0xff]  }
  0xc6   : > { %3002 = vmatprep.mubr.msk.bf16.mxu0 %vm491_vm5, %v1292_v23  ;;  %3062 = vmatprep.subr.bf16.mxu1 %v3425_v29  ;;  %v2086_v22 = vrot.slane %v3229_v20, 1  ;;  %v2088_v23 = vrot.slane %v3231_v9, 1 }
  0xc7   : > { %v1860_v38 = vrot.slane %v1858_v7, 1 }
  0xc8   : > { %v2087_v25 = vsel %vm876_vm10, %v2084_v15, %v2086_v22 }
  0xc9   : > { %v1861_v43 = vsel %vm646_vm9, %v1856_v33, %v1860_v38  ;;  %v1864_v4 = vor.u32 %v1862_v42, %v1860_v38 }
  0xcb   : > { %v1869_v52 = vsel %vm646_vm9, %v1864_v4, %v1868_v47 }
  0xcc   : > { %3013 = vmatmul.mubr.msk.bf16.gmra.mxu1 %vm491_vm5, %v1486_v34  ;;  %3003 = vmatmul.mubr.msk.bf16.gmra.mxu0 %vm491_vm5, %v1295_v30  ;;  %v3233_v30 = vld [vmem:[#allocation9] sm:$0xff]  }
  0xcd   : > { %3016 = vmatprep.mubr.msk.bf16.mxu1 %vm491_vm5, %v1488_v35  ;;  %3022 = vmatprep.mubr.msk.bf16.mxu0 %vm491_vm5, %v3209_v31  ;;  %v3234_v31 = vld [vmem:[%s3656_s12 + $0x10] sm:$0xff]  }
  0xd4   : > { %3017 = vmatmul.mubr.msk.bf16.gmra.mxu1 %vm491_vm5, %v1487_v27  ;;  %3023 = vmatmul.mubr.msk.bf16.vlgmr.msra.gmra.mxu0 %vm491_vm5, %v3211_v40  ;;  %v2089_v27 = vsel %vm876_vm10, %v2086_v22, %v2088_v23 }
  0xd5   : > { %3049 = vmatpush3.bf16.msra.mxu0 %v3210_v3  ;;  %3036 = vmatprep.mubr.msk.bf16.mxu1 %vm491_vm5, %v1861_v43  ;;  %v2080_v3 = vrot.slane %v3224_v60, 1 }
  0xd6   : > { %3026 = vmatprep.mubr.msk.bf16.mxu0 %vm491_vm5, %v3214_v44  ;;  %3080 = vmatprep.subr.bf16.mxu0 %v3425_v29 }
  0xd7   : > { %v2081_v11 = vsel %vm876_vm10, %v2079_v2, %v2080_v3  ;;  %v2083_v18 = vsel %vm876_vm10, %v2080_v3, %v2082_v14 }
  0xdc   : > { %3037 = vmatmul.mubr.msk.bf16.vlgmr.msra.gmra.mxu1 %vm491_vm5, %v1869_v52  ;;  %3027 = vmatmul.mubr.msk.bf16.gmra.mxu0 %vm491_vm5, %v3216_v8 }
  0xdd   : > { %3063 = vmatpush3.bf16.msra.mxu1 %v3217_v53  ;;  %3040 = vmatprep.mubr.msk.bf16.mxu1 %vm491_vm5, %v1877_v55 }
  0xde   : > { %3030 = vmatprep.mubr.msk.bf16.mxu0 %vm491_vm5, %v3219_v56  ;;  %3068 = vmatprep.subr.bf16.mxu1 %v3425_v29 }
  0xe4   : > { %3041 = vmatmul.mubr.msk.bf16.gmra.mxu1 %vm491_vm5, %v1885_v1  ;;  %3031 = vmatmul.mubr.msk.bf16.gmra.mxu0 %vm491_vm5, %v3221_v5 }
  0xe5   : > { %3044 = vmatprep.mubr.msk.bf16.mxu1 %vm491_vm5, %v1893_v10  ;;  %3050 = vmatprep.mubr.msk.bf16.mxu0 %vm491_vm5, %v2081_v11 }
  0xec   : > { %3045 = vmatmul.mubr.msk.bf16.gmra.mxu1 %vm491_vm5, %v1896_v17  ;;  %3051 = vmatmul.mubr.msk.bf16.vlgmr.msra.gmra.mxu0 %vm491_vm5, %v2083_v18 }
  0xed   : > { %3081 = vmatpush3.bf16.msra.mxu0 %v3226_v19  ;;  %3064 = vmatprep.mubr.msk.bf16.mxu1 %vm3426_vm11, %v3425_v29 }
  0xee   : > { %3054 = vmatprep.mubr.msk.bf16.mxu0 %vm491_vm5, %v2085_v21 }
  0xf4   : > { %3065 = vmatmul.mubr.msk.bf16.vlgmr.msra.gmra.mxu1 %vm491_vm5, %v3228_v24  ;;  %3055 = vmatmul.mubr.msk.bf16.gmra.mxu0 %vm491_vm5, %v2087_v25 }
  0xf5   : > { %3069 = vmatpush3.bf16.msra.mxu1 %v3230_v26  ;;  %3070 = vmatprep.mubr.msk.bf16.mxu1 %vm3426_vm11, %v3425_v29 }
  0xf6   : > { %3058 = vmatprep.mubr.msk.bf16.mxu0 %vm491_vm5, %v2089_v27  ;;  %3074 = vmatprep.subr.bf16.mxu1 %v3425_v29 }
  0xfc   : > { %3071 = vmatmul.mubr.msk.bf16.vlgmr.msra.gmra.mxu1 %vm491_vm5, %v3232_v28  ;;  %3059 = vmatmul.mubr.msk.bf16.gmra.mxu0 %vm491_vm5, %v2088_v23 }
  0xfd   : > { %3075 = vmatpush3.bf16.msra.mxu1 %v3233_v30  ;;  %3076 = vmatprep.mubr.msk.bf16.mxu1 %vm3426_vm11, %v3425_v29 }
  0xfe   : > { %3082 = vmatprep.mubr.msk.bf16.mxu0 %vm3426_vm11, %v3425_v29 }
 0x104   : > { %3077 = vmatmul.mubr.msk.bf16.vlgmr.msra.gmra.mxu1 %vm491_vm5, %v3234_v31  ;;  %3083 = vmatmul.mubr.msk.bf16.vlgmr.msra.gmra.mxu0 %vm491_vm5, %v3235_v32 }
 0x14c   : > { %v2940_v34 = vpop.f32.mrf.mxu0 }
 0x14e   : > { %v544_v35 = vpop.f32.mrf.mxu0 }
 0x150   : > { %v2941_v36 = vpop.f32.mrf.mxu0 }
 0x152   : > { %v547_v7 = vpop.f32.mrf.mxu0 }
 0x154   : > { %v2954_v37 = vpop.f32.mrf.mxu1  ;;  %v2944_v33 = vpop.f32.mrf.mxu0 }
 0x156   : > { %v752_v38 = vpop.f32.mrf.mxu1  ;;  %v560_v39 = vpop.f32.mrf.mxu0 }
 0x157   : > { %v809_v40 = vadd.f32 %v752_v38, %v544_v35 }
 0x158   : > { %v2955_v41 = vpop.f32.mrf.mxu1  ;;  %v2945_v42 = vpop.f32.mrf.mxu0 }
 0x159   : > { %v812_v43 = vadd.f32 %v2955_v41, %v2941_v36 }
 0x15a   : > { %v755_v44 = vpop.f32.mrf.mxu1  ;;  %v563_v29 = vpop.f32.mrf.mxu0 }
 0x15b   : > { %v810_v45 = vadd.f32 %v755_v44, %v547_v7 }
 0x15c   : > { %v2958_v46 = vpop.f32.mrf.mxu1  ;;  %v2948_v47 = vpop.f32.mrf.mxu0 }
 0x15d   : > { %v815_v48 = vadd.f32 %v2958_v46, %v2944_v33 }
 0x15e   : > { %v768_v4 = vpop.f32.mrf.mxu1  ;;  %v576_v49 = vpop.f32.mrf.mxu0 }
 0x15f   : > { %v813_v50 = vadd.f32 %v768_v4, %v560_v39 }
 0x160   : > { %v2959_v16 = vpop.f32.mrf.mxu1  ;;  %v2949_v8 = vpop.f32.mrf.mxu0 }
 0x161   : > { %v816_v51 = vadd.f32 %v2959_v16, %v2945_v42 }
 0x162   : > { %v771_v52 = vpop.f32.mrf.mxu1  ;;  %v579_v53 = vpop.f32.mrf.mxu0 }
 0x164   : > { %v2962_v54 = vpop.f32.mrf.mxu1  ;;  %v2968_v55 = vpop.f32.mrf.mxu0 }
 0x165   : > { %v819_v56 = vadd.f32 %v2962_v54, %v2948_v47 }
 0x166   : > { %v784_v57 = vpop.f32.mrf.mxu1  ;;  %v946_v58 = vpop.f32.mrf.mxu0 }
 0x167   : > { %v3868_v59 = vadd.f32 %v946_v58, %v809_v40 }
 0x168   : > { %v2963_v60 = vpop.f32.mrf.mxu1  ;;  %v2969_v61 = vpop.f32.mrf.mxu0 }
 0x169   : > { %v1006_v62 = vadd.f32 %v2969_v61, %v812_v43 }
 0x16a   : > { %v787_v63 = vpop.f32.mrf.mxu1  ;;  %v949_v0 = vpop.f32.mrf.mxu0 }
 0x16b   : > { %v818_v2 = vadd.f32 %v787_v63, %v579_v53  ;;  %v3870_v3 = vadd.f32 %v949_v0, %v810_v45 }
 0x16c   : > { %v2982_v5 = vpop.f32.mrf.mxu1  ;;  %v2972_v1 = vpop.f32.mrf.mxu0 }
 0x16d   : > { %v1009_v6 = vadd.f32 %v2972_v1, %v815_v48 }
 0x16e   : > { %v3872_v10 = vpop.f32.mrf.mxu1  ;;  %v962_v11 = vpop.f32.mrf.mxu0 }
 0x16f   : > { %v3874_v12 = vadd.f32 %v962_v11, %v813_v50 }
 0x170   : > { %v2983_v13 = vpop.f32.mrf.mxu1  ;;  %v2973_v14 = vpop.f32.mrf.mxu0 }
 0x171   : > { %v3876_v15 = vadd.f32 %v2983_v13, %v1006_v62  ;;  %v1010_v17 = vadd.f32 %v2973_v14, %v816_v51 }
 0x172   : > { %v3878_v18 = vpop.f32.mrf.mxu1  ;;  %v965_v19 = vpop.f32.mrf.mxu0 }
 0x174   : > { %v2986_v20 = vpop.f32.mrf.mxu1  ;;  %v2976_v21 = vpop.f32.mrf.mxu0 }
 0x175   : > { %v3880_v9 = vadd.f32 %v2986_v20, %v1009_v6  ;;  %v1013_v22 = vadd.f32 %v2976_v21, %v819_v56 }
 0x176   : > { %v3882_v23 = vpop.f32.mrf.mxu1  ;;  %v978_v24 = vpop.f32.mrf.mxu0 }
 0x178   : > { %v2987_v25 = vpop.f32.mrf.mxu1  ;;  %v2977_v26 = vpop.f32.mrf.mxu0 }
 0x179   : > { %v3884_v27 = vadd.f32 %v2987_v25, %v1010_v17  ;;  %v1182_v26 = vadd.f32 %v3872_v10, %v3868_v59  ;;  %v1186_v59 = vadd.f32 %v3882_v23, %v3874_v12 }
 0x17a   : > { %v1144_v28 = vpop.f32.mrf.mxu1  ;;  %v981_v30 = vpop.f32.mrf.mxu0 }
 0x17b   : > { %v3886_v31 = vadd.f32 %v981_v30, %v818_v2  ;;  %v1183_v28 = vadd.f32 %v3878_v18, %v3870_v3 }
 0x17c   : > { %v2990_v32 = vpop.f32.mrf.mxu1  ;;  %v2996_v34 = vpop.f32.mrf.mxu0 }
 0x17d   : > { %v3888_v35 = vadd.f32 %v2990_v32, %v1013_v22 }
 0x17e   : > { %v1157_v36 = vpop.f32.mrf.mxu1  ;;  %v1354_v7 = vpop.f32.mrf.mxu0 }
 0x17f   : > { %v1411_v34 = vadd.f32 %v1354_v7, %v1182_v26 }
 0x180   : > { %v2991_v37 = vpop.f32.mrf.mxu1  ;;  %v3890_v33 = vpop.f32.mrf.mxu0 }
 0x181   : > { %v1414_v7 = vadd.f32 %v3890_v33, %v3876_v15 }
 0x182   : > { %v3892_v38 = vpop.f32.mrf.mxu1  ;;  %v1357_v39 = vpop.f32.mrf.mxu0 }
 0x183   : > { %v1412_v36 = vadd.f32 %v1357_v39, %v1183_v28  ;;  %v1191_v23 = vadd.f32 %v3892_v38, %v3886_v31 }
 0x184   : > { %v3010_v40 = vpop.f32.mrf.mxu1  ;;  %v3894_v41 = vpop.f32.mrf.mxu0 }
 0x186   : > { %v1547_v42 = vpop.f32.mrf.mxu1  ;;  %v1370_v43 = vpop.f32.mrf.mxu0 }
 0x187   : > { %v1415_v39 = vadd.f32 %v1370_v43, %v1186_v59 }
 0x188   : > { %v3896_v44 = vpop.f32.mrf.mxu1  ;;  %v3898_v29 = vpop.f32.mrf.mxu0 }
 0x18a   : > { %v1550_v45 = vpop.f32.mrf.mxu1  ;;  %v1373_v46 = vpop.f32.mrf.mxu0 }
 0x18b   : > { %v1604_v46 = vadd.f32 %v1547_v42, %v1411_v34 }
 0x18c   : > { %v3900_v47 = vpop.f32.mrf.mxu1  ;;  %v3902_v48 = vpop.f32.mrf.mxu0 }
 0x18e   : > { %v1563_v4 = vpop.f32.mrf.mxu1  ;;  %v1386_v49 = vpop.f32.mrf.mxu0 }
 0x18f   : > { %v1605_v49 = vadd.f32 %v1550_v45, %v1412_v36 }
 0x190   : > { %v3904_v50 = vpop.f32.mrf.mxu1  ;;  %v3005_v16 = vpop.f32.mrf.mxu0 }
 0x192   : > { %v1566_v8 = vpop.f32.mrf.mxu1  ;;  %v3906_v51 = vpop.f32.mrf.mxu0 }
 0x193   : > { %v1420_v43 = vadd.f32 %v3906_v51, %v1191_v23 }
 0x194   : > { %v3908_v52 = vpop.f32.mrf.mxu1  ;;  %v3024_v53 = vpop.f32.mrf.mxu0 }
 0x196   : > { %v1579_v54 = vpop.f32.mrf.mxu1  ;;  %v1726_v55 = vpop.f32.mrf.mxu0 }
 0x197   : > { %v1783_v53 = vadd.f32 %v1726_v55, %v1604_v46  ;;  %v1607_v55 = vadd.f32 %v3896_v44, %v1414_v7  ;;  %v1417_v44 = vadd.f32 %v3894_v41, %v3880_v9 }
 0x198   : > { %v3019_v56 = vpop.f32.mrf.mxu1  ;;  %v3025_v57 = vpop.f32.mrf.mxu0 }
 0x19a   : > { %v3910_v58 = vpop.f32.mrf.mxu1  ;;  %v1729_v60 = vpop.f32.mrf.mxu0 }
 0x19b   : > { %v1784_v54 = vadd.f32 %v1729_v60, %v1605_v49  ;;  %v1608_v60 = vadd.f32 %v1563_v4, %v1415_v39  ;;  %v1418_v4 = vadd.f32 %v3898_v29, %v3884_v27 }
 0x19c   : > { %v3038_v61 = vpop.f32.mrf.mxu1  ;;  %v3912_v62 = vpop.f32.mrf.mxu0 }
 0x19d   : > { %v1611_v34 = vadd.f32 %v3904_v50, %v1418_v4 }
 0x19e   : > { %v1955_v63 = vpop.f32.mrf.mxu1  ;;  %v1742_v0 = vpop.f32.mrf.mxu0 }
 0x19f   : > { %v2012_v10 = vadd.f32 %v1955_v63, %v1783_v53  ;;  %v1786_v63 = vadd.f32 %v3025_v57, %v1607_v55  ;;  %v1421_v57 = vadd.f32 %v3902_v48, %v3888_v35 }
 0x1a0   : > { %v3039_v2 = vpop.f32.mrf.mxu1  ;;  %v3914_v5 = vpop.f32.mrf.mxu0 }
 0x1a1   : > { %v1614_v9 = vadd.f32 %v3908_v52, %v1421_v57 }
 0x1a2   : > { %v1958_v1 = vpop.f32.mrf.mxu1  ;;  %v1745_v6 = vpop.f32.mrf.mxu0 }
 0x1a3   : > { %v2013_v6 = vadd.f32 %v1958_v1, %v1784_v54  ;;  %v1787_v1 = vadd.f32 %v1742_v0, %v1608_v60  ;;  %v1613_v0 = vadd.f32 %v3910_v58, %v1420_v43  ;;  %v1790_v58 = vadd.f32 %v3914_v5, %v1611_v34 }
 0x1a4   : > { %v3916_v11 = vpop.f32.mrf.mxu1  ;;  %v3918_v13 = vpop.f32.mrf.mxu0 }
 0x1a6   : > { %v1971_v14 = vpop.f32.mrf.mxu1  ;;  %v1758_v17 = vpop.f32.mrf.mxu0 }
 0x1a8   : > { %v3920_v19 = vpop.f32.mrf.mxu1  ;;  %v3033_v20 = vpop.f32.mrf.mxu0 }
 0x1aa   : > { %v1974_v21 = vpop.f32.mrf.mxu1  ;;  %v1761_v22 = vpop.f32.mrf.mxu0 }
 0x1ab   : > { %v1792_v41 = vadd.f32 %v1761_v22, %v1613_v0  ;;  %v2019_v22 = vadd.f32 %v3920_v19, %v1790_v58 }
 0x1ac   : > { %v3922_v24 = vpop.f32.mrf.mxu1  ;;  %v3052_v25 = vpop.f32.mrf.mxu0 }
 0x1ae   : > { %v1987_v30 = vpop.f32.mrf.mxu1  ;;  %v2148_v32 = vpop.f32.mrf.mxu0 }
 0x1af   : > { %v2205_v17 = vadd.f32 %v2148_v32, %v2012_v10  ;;  %v2015_v30 = vadd.f32 %v3039_v2, %v1786_v63  ;;  %v2016_v32 = vadd.f32 %v1971_v14, %v1787_v1  ;;  %v1610_v14 = vadd.f32 %v3900_v47, %v1417_v44 }
 0x1b0   : > { %v3047_v37 = vpop.f32.mrf.mxu1  ;;  %v3053_v40 = vpop.f32.mrf.mxu0 }
 0x1b1   : > { %v2208_v51 = vadd.f32 %v3053_v40, %v2015_v30  ;;  %v1789_v46 = vadd.f32 %v3912_v62, %v1610_v14  ;;  %v1793_v40 = vadd.f32 %v3918_v13, %v1614_v9 }
 0x1b2   : > { %v1990_v16 = vpop.f32.mrf.mxu1  ;;  %v2151_v8 = vpop.f32.mrf.mxu0 }
 0x1b3   : > { %v2206_v42 = vadd.f32 %v2151_v8, %v2013_v6  ;;  %v2021_v47 = vadd.f32 %v1990_v16, %v1792_v41  ;;  %v2018_v52 = vadd.f32 %v3916_v11, %v1789_v46  ;;  %v2022_v53 = vadd.f32 %v3922_v24, %v1793_v40 }
 0x1b4   : > { %v2281_v56 = vpop.f32.mrf.mxu1  ;;  %v3056_v61 = vpop.f32.mrf.mxu0 }
 0x1b5   : > { %v2288_v21 = vmul.f32 %v2281_v56, %v2205_v17  ;;  %v2211_v59 = vadd.f32 %v3056_v61, %v2018_v52 }
 0x1b6   : > { %v3066_v3 = vpop.f32.mrf.mxu1  ;;  %v2164_v18 = vpop.f32.mrf.mxu0 }
 0x1b7   : > { %v2209_v2 = vadd.f32 %v2164_v18, %v2016_v32 }
 0x1b8   : > { %v2284_v45 = vpop.f32.mrf.mxu1  ;;  %v3057_v20 = vpop.f32.mrf.mxu0 }
 0x1b9   : > { %v2289_v25 = vmul.f32 %v2284_v45, %v2206_v42  ;;  %v2212_v5 = vadd.f32 %v3057_v20, %v2019_v22 }
 0x1ba   : > { %v3067_v26 = vpop.f32.mrf.mxu1  ;;  %v2167_v12 = vpop.f32.mrf.mxu0 }
 0x1bb   : > { %v2845_v28 = vpack.c.bf16 %v2289_v25, %v2288_v21 }
 0x1bc   : > { %v2355_v15 = vpop.f32.mrf.mxu1  ;;  %v3060_v33 = vpop.f32.mrf.mxu0 }
 0x1bd   : > { %2846 = vst [vmem:[%s3937_s21] sm:$0xff] %v2845_v28   ;;  %v2362_v27 = vmul.f32 %v2355_v15, %v2208_v51  ;;  %v2215_v13 = vadd.f32 %v3060_v33, %v2022_v53 }
 0x1be   : > { %v3072_v31 = vpop.f32.mrf.mxu1  ;;  %v2180_v38 = vpop.f32.mrf.mxu0 }
 0x1c0   : > { %v2358_v36 = vpop.f32.mrf.mxu1  ;;  %v3061_v37 = vpop.f32.mrf.mxu0 }
 0x1c1   : > { %v2363_v29 = vmul.f32 %v2358_v36, %v2209_v2 }
 0x1c2   : > { %v3073_v35 = vpop.f32.mrf.mxu1  ;;  %v2183_v48 = vpop.f32.mrf.mxu0 }
 0x1c3   : > { %v2850_v50 = vpack.c.bf16 %v2363_v29, %v2362_v27  ;;  %v2214_v54 = vadd.f32 %v2183_v48, %v2021_v47 }
 0x1c4   : > { %v2430_v49 = vpop.f32.mrf.mxu1  ;;  %v2505_v8 = vpop.f32.mrf.mxu0 }
 0x1c5   : > { %2862 = vst [vmem:[%s3937_s21 + $0x8] sm:$0xff] %v2850_v50   ;;  %v2437_v11 = vmul.f32 %v2430_v49, %v2211_v59  ;;  %v2512_v19 = vmul.f32 %v2505_v8, %v2214_v54 }
 0x1c6   : > { %v3078_v62 = vpop.f32.mrf.mxu1  ;;  %v3084_v56 = vpop.f32.mrf.mxu0 }
 0x1c8   : > { %v2433_v16 = vpop.f32.mrf.mxu1  ;;  %v2508_v10 = vpop.f32.mrf.mxu0 }
 0x1c9   : > { %v2438_v24 = vmul.f32 %v2433_v16, %v2212_v5  ;;  %v2513_v6 = vmul.f32 %v2508_v10, %v2215_v13 }
 0x1ca   : > { %v3079_v3 = vpop.f32.mrf.mxu1  ;;  %v3085_v61 = vpop.f32.mrf.mxu0 }
 0x1cb   : > { %v2855_v18 = vpack.c.bf16 %v2438_v24, %v2437_v11  ;;  %v2860_v7 = vpack.c.bf16 %v2513_v6, %v2512_v19 }
 0x1cd   : > { %2863 = vst [vmem:[%s3937_s21 + $0x10] sm:$0xff] %v2855_v18   ;;  %2864 = vst [vmem:[%s3937_s21 + $0x18] sm:$0xff] %v2860_v7  }
 0x1ce   : > { %3357 = shalt.err (!%p3354_p13)
}
 0x1cf   : > { %s3358_s24 = scalar_lea.hbm %s3964_s6, 512  ;;  %s3362_s13 = scalar_lea.hbm %s4013_s4, 1024 }
 0x1d0   : > { %p3359_p1 = scmp.ne.s32.totalorder %s3964_s6, %s3358_s24  ;;  %p3363_p7 = scmp.lt.s32.totalorder %s3964_s6, %s4013_s4 }
 0x1d1   : > { %p3364_p2 = scmp.lt.s32.totalorder %s3362_s13, %s3358_s24 }
 0x1d2   : > { %p3360_p4 = pnand %p3359_p1, %p4046_p12 }
 0x1d3   : > { %p3365_p8 = por %p3364_p2, %p3363_p7 }
 0x1d4   : > { %p3361_p5 = pneg %p3360_p4 }
 0x1d6   : > { %p3366_p6 = pnand %p3365_p8, %p3361_p5 }
 0x1d8   : > { %3369 = shalt.err (!%p3366_p6)
}
 0x1d9   : > { %s3428_s8 = smov 64   ;;  %s3429_s23 = smov 4  }
 0x1da   : > { %3098 = dma.vmem_to_hbm [thread:$0]  (%p4046_p12), %s3959_s30, 512, %s3964_s6, %s2526_s19, %s3428_s8, %s3428_s8, %s3429_s23  }
 0x1db PF: > { %s2554_s12 = sand.u32 1, %s3404_s15   ;;  %p4047_p0 = scmp.ne.s32.totalorder %s4026_s22, 0 }
 0x1dc   : > { %p4048_p10 = scmp.ge.s32.totalorder %s3416_s18, 2  ;;  %s2555_s21 = scalar_lea.sflag [#allocation6], %s2554_s12 }
 0x1de   : > { %p3115_p3 = pnand %p4048_p10, %p4047_p0 }
 0x1e0   : > { %p3116_p11 = pneg %p3115_p3 }
 0x1e2   : > { %3399 = dma.done.wait (%p3116_p11), %s2555_s21, 512  }
 0x1e3   : > { %3401 = vsyncadd (%p3116_p11), %s2555_s21, 4294966784  ;;  %p21_p9 = scmp.ge.s32.totalorder %s3533_s11, 4   ;;  %s4049_s15 = smov %s3408_s16 }
 0x1e4   : > { %s4050_s16 = smov %s3412_s17  ;;  %s4051_s17 = smov %s3549_s20 }
 0x1e5   : > { %s4052_s18 = smov %s3533_s11  ;;  %23 = sbr.rel (!%p21_p9) target bundleno = 12 (0xc), region = 119 }
 0x1ea   :  { %2560 = vsyncpa [#allocation5], 1 }
 0x1eb   :  { %2562 = vsyncpa [#allocation5 + $0x1], 1 }
 0x1ec   :  { %2563 = vsyncpa [#allocation8], 1 }
 0x1ed   :  { %2564 = vsyncpa [#allocation11], 1 }
 0x1ee   :  { %2566 = vsyncpa [#allocation11 + $0x1], 1 }
 0x1ef   :  { %2567 = vsyncpa [#allocation6], 1 }
 0x1f0   :  { %2569 = vsyncpa [#allocation6 + $0x1], 1 }

</bundles_post_ra>
